<compile_context>
chip_gen: v7x
topology: tpu7x:2x2x1
jax: 0.10.0
libtpu: 0.0.40
codegen_flags: <defaults>
</compile_context>

<pallas_src>
import jax
import jax.numpy as jnp
from jax.experimental import pallas as pl
from jax.experimental.pallas import tpu as pltpu

LANE = 128
SUBLANE = 8
TIME_CHUNK = 8


def _round_up(x, m):
    return (x + m - 1) // m * m


def _largest_divisor(n, cap):
    for d in range(min(n, cap), 0, -1):
        if n % d == 0:
            return d
    return 1


def _invariant_spec(shape):
    # Grid-invariant operand: single-buffered (no need to double-buffer it).
    return pl.BlockSpec(shape, lambda i: (0,) * len(shape),
                        pipeline_mode=pl.Buffered(1))


def _make_lstm_kernel(seq_len, time_chunk, batch, hidden):
    """Recurrence kernel over one time-chunk per grid step."""
    T, Tt, B, H = seq_len, time_chunk, batch, hidden
    needs_mask = (T % Tt) != 0

    def kernel(x_ref, wx_ref, wh_ref, b_ref, h_out_ref, h_ref, c_ref):
        tc = pl.program_id(0)

        @pl.when(tc == 0)
        def _init():
            h_ref[...] = jnp.zeros_like(h_ref)
            c_ref[...] = jnp.zeros_like(c_ref)

        # One wide MXU matmul projects the whole chunk's inputs at once:
        #   (Tt*B, E) @ (E, 4H) -> (Tt*B, 4H), bias added once (f32 accumulate).
        xproj = (jnp.dot(x_ref[...], wx_ref[...],
                         preferred_element_type=jnp.float32)
                 + b_ref[...])

        wh = wh_ref[...]          # (H, 4H) bf16, loaded once per chunk
        h = h_ref[...]            # (B, H) f32 carry
        c = c_ref[...]

        for lt in range(Tt):      # short static inner loop (unrolled trace)
            # One fused recurrence matmul per step; gate slices are 128-aligned.
            gates = xproj[lt * B:(lt + 1) * B, :] + jnp.dot(
                h.astype(jnp.bfloat16), wh, preferred_element_type=jnp.float32)
            i_g = jax.nn.sigmoid(gates[:, 0 * H:1 * H])
            f_g = jax.nn.sigmoid(gates[:, 1 * H:2 * H])
            g_g = jnp.tanh(gates[:, 2 * H:3 * H])
            o_g = jax.nn.sigmoid(gates[:, 3 * H:4 * H])
            c_new = f_g * c + i_g * g_g
            h_new = o_g * jnp.tanh(c_new)
            if needs_mask:
                # Padded trailing time steps must not advance the state.
                m = ((tc * Tt + lt) < T).astype(jnp.float32)
                h = m * h_new + (1.0 - m) * h
                c = m * c_new + (1.0 - m) * c
            else:
                h, c = h_new, c_new

        h_ref[...] = h
        c_ref[...] = c

        @pl.when(tc == pl.num_programs(0) - 1)
        def _finalize():
            h_out_ref[...] = h

    return kernel


def _fc_kernel(h_ref, wfc_ref, bfc_ref, out_ref):
    h = h_ref[...].astype(jnp.bfloat16)
    out_ref[...] = (jnp.dot(h, wfc_ref[...], preferred_element_type=jnp.float32)
                    + bfc_ref[...])


def lstm_forward_pallas(x2d, wx, wh, b, wfc, bfc, *, seq_len, time_chunk, batch_pad):
    """x2d: (T_pad*B_pad, E_pad) bf16 time-major flattened embedded sequence."""
    tt_b, e_p = x2d.shape
    n_chunks = x2d.shape[0] // tt_b * 1  # placeholder, recomputed below
    n_chunks = x2d.shape[0] // (time_chunk * batch_pad)
    h_p = wh.shape[0]
    v_p = wfc.shape[1]

    kernel = _make_lstm_kernel(seq_len, time_chunk, batch_pad, h_p)

    # --- recurrence: grid over time chunks (sequential / "arbitrary") ---
    h_last = pl.pallas_call(
        kernel,
        out_shape=jax.ShapeDtypeStruct((batch_pad, h_p), jnp.float32),
        grid_spec=pltpu.PrefetchScalarGridSpec(
            num_scalar_prefetch=0,
            grid=(n_chunks,),
            in_specs=[
                pl.BlockSpec((time_chunk * batch_pad, e_p),
                             lambda t: (t, 0)),          # chunk of embedded inputs
                _invariant_spec((e_p, 4 * h_p)),          # fused W_ih^T
                _invariant_spec((h_p, 4 * h_p)),          # fused W_hh^T
                _invariant_spec((1, 4 * h_p)),            # fused bias (f32)
            ],
            out_specs=pl.BlockSpec((batch_pad, h_p), lambda t: (0, 0)),
            scratch_shapes=[
                pltpu.VMEM((batch_pad, h_p), jnp.float32),   # h carry
                pltpu.VMEM((batch_pad, h_p), jnp.float32),   # c carry
            ],
        ),
        compiler_params=pltpu.CompilerParams(
            dimension_semantics=("arbitrary",)),
    )(x2d, wx, wh, b)

    # --- final FC: separate call, tiled over the vocab dimension ---
    tv = LANE * _largest_divisor(v_p // LANE, 8)
    logits_pad = pl.pallas_call(
        _fc_kernel,
        out_shape=jax.ShapeDtypeStruct((batch_pad, v_p), jnp.float32),
        grid_spec=pltpu.PrefetchScalarGridSpec(
            num_scalar_prefetch=0,
            grid=(v_p // tv,),
            in_specs=[
                _invariant_spec((batch_pad, h_p)),        # h_T (grid-invariant)
                pl.BlockSpec((h_p, tv), lambda j: (0, j)),
                pl.BlockSpec((1, tv), lambda j: (0, j)),
            ],
            out_specs=pl.BlockSpec((batch_pad, tv), lambda j: (0, j)),
        ),
        compiler_params=pltpu.CompilerParams(
            dimension_semantics=("parallel",)),
    )(h_last, wfc, bfc)

    return logits_pad


def lstm_model_forward(tokens, kparams):
    """tokens: (B, T) int32 token ids. Returns (B, V) f32 logits."""
    B, T = tokens.shape
    e_p = kparams["embedding"].shape[1]
    V = kparams["vocab_size"]

    b_pad = _round_up(max(B, SUBLANE), SUBLANE)
    t_pad = _round_up(T, TIME_CHUNK)

    # Embedding gather + time-major layout + padding (plain-JAX glue).
    # TODO(synk): fuse the embedding gather into the kernel via scalar-prefetched
    # token ids + per-row DMA once T*B*E is large enough to be HBM-bound.
    emb = kparams["embedding"][tokens]                    # (B, T, Ep) bf16
    x = jnp.transpose(emb, (1, 0, 2))                     # (T, B, Ep)
    x = jnp.pad(x, ((0, t_pad - T), (0, b_pad - B), (0, 0)))
    x2d = x.reshape(t_pad * b_pad, e_p)

    logits_pad = lstm_forward_pallas(
        x2d, kparams["wx"], kparams["wh"], kparams["b"],
        kparams["wfc"], kparams["bfc"],
        seq_len=T, time_chunk=TIME_CHUNK, batch_pad=b_pad)

    return logits_pad[:B, :V]


def init_params(key, vocab_size, embed_dim, hidden_dim):
    """Logical (unpadded, f32) parameters in fused-gate layout."""
    k0, k1, k2, k3, k4, k5, k6 = jax.random.split(key, 7)
    scale = 0.1

    emb = scale * jax.random.normal(k0, (vocab_size, embed_dim), jnp.float32)
    emb = emb.at[0].set(0.0)                   # padding_idx=0

    # PyTorch layout: W_ih (4H, E), W_hh (4H, H), gate order [i, f, g, o].
    w_ih = scale * jax.random.normal(k1, (4 * hidden_dim, embed_dim), jnp.float32)
    w_hh = scale * jax.random.normal(k2, (4 * hidden_dim, hidden_dim), jnp.float32)
    b_ih = scale * jax.random.normal(k3, (4 * hidden_dim,), jnp.float32)
    b_hh = scale * jax.random.normal(k4, (4 * hidden_dim,), jnp.float32)
    w_fc = scale * jax.random.normal(k5, (vocab_size, hidden_dim), jnp.float32)
    b_fc = scale * jax.random.normal(k6, (vocab_size,), jnp.float32)

    # Fused layout: gates = x @ wx + h @ wh + b, columns ordered [i|f|g|o].
    return {
        "embedding": emb,                      # (V, E)
        "wx": w_ih.T,                          # (E, 4H)
        "wh": w_hh.T,                          # (H, 4H)
        "b": (b_ih + b_hh)[None, :],           # (1, 4H)
        "wfc": w_fc.T,                         # (H, V)
        "bfc": b_fc[None, :],                  # (1, V)
    }


def prepare_kernel_params(params):
    """Pad to (8,128)-aligned shapes and cast MXU operands to bf16.

    Padding is with zeros, which leaves the math unchanged: padded gate columns
    get zero weights/bias, so padded hidden units stay exactly 0 and never leak
    into real units (wh rows / wfc rows for padded H are zero too).
    """
    E = params["embedding"].shape[1]
    H = params["wh"].shape[0]
    V = params["wfc"].shape[1]
    e_p = _round_up(E, LANE)
    h_p = _round_up(H, LANE)
    v_p = _round_up(V, LANE)

    emb = jnp.zeros((params["embedding"].shape[0], e_p), jnp.float32)
    emb = emb.at[:, :E].set(params["embedding"])

    wx = jnp.zeros((e_p, 4 * h_p), jnp.float32)
    wh = jnp.zeros((h_p, 4 * h_p), jnp.float32)
    b = jnp.zeros((1, 4 * h_p), jnp.float32)
    for k in range(4):  # pad each gate block so slices stay lane-aligned
        wx = wx.at[:E, k * h_p:k * h_p + H].set(params["wx"][:, k * H:(k + 1) * H])
        wh = wh.at[:H, k * h_p:k * h_p + H].set(params["wh"][:, k * H:(k + 1) * H])
        b = b.at[:, k * h_p:k * h_p + H].set(params["b"][:, k * H:(k + 1) * H])

    wfc = jnp.zeros((h_p, v_p), jnp.float32).at[:H, :V].set(params["wfc"])
    bfc = jnp.zeros((1, v_p), jnp.float32).at[:, :V].set(params["bfc"])

    return {
        "embedding": emb.astype(jnp.bfloat16),   # bf16 activations into the MXU
        "wx": wx.astype(jnp.bfloat16),
        "wh": wh.astype(jnp.bfloat16),
        "b": b,                                  # bias / elementwise stays f32
        "wfc": wfc.astype(jnp.bfloat16),
        "bfc": bfc,
        "vocab_size": V,
    }


def reference_forward(tokens, params):
    """Pure-JAX f32 reference reproducing the PyTorch forward exactly."""
    emb = params["embedding"][tokens]          # (B, T, E)
    B, T, _ = emb.shape
    H = params["wh"].shape[0]
    h = jnp.zeros((B, H), jnp.float32)
    c = jnp.zeros((B, H), jnp.float32)
    for t in range(T):
        gates = emb[:, t, :] @ params["wx"] + h @ params["wh"] + params["b"]
        i_g = jax.nn.sigmoid(gates[:, 0 * H:1 * H])
        f_g = jax.nn.sigmoid(gates[:, 1 * H:2 * H])
        g_g = jnp.tanh(gates[:, 2 * H:3 * H])
        o_g = jax.nn.sigmoid(gates[:, 3 * H:4 * H])
        c = f_g * c + i_g * g_g
        h = o_g * jnp.tanh(c)
    return h @ params["wfc"] + params["bfc"]


if __name__ == "__main__":
    VOCAB, EMBED, HIDDEN = 128, 32, 32
    BATCH, SEQ = 2, 8

    key = jax.random.PRNGKey(0)
    pkey, tkey = jax.random.split(key)
    params = init_params(pkey, VOCAB, EMBED, HIDDEN)
    kparams = prepare_kernel_params(params)
    tokens = jax.random.randint(tkey, (BATCH, SEQ), 0, VOCAB, dtype=jnp.int32)

    logits = lstm_model_forward(tokens, kparams)
    logits = jax.block_until_ready(logits)

    ref = reference_forward(tokens, params)
    assert logits.shape == (BATCH, VOCAB)
    # bf16 MXU operands vs f32 reference -> loosened tolerance.
    assert jnp.allclose(logits, ref, rtol=2e-2, atol=2e-2), "mismatch vs reference"

    print("KERNEL_OK")
</pallas_src>

<mosaic_0001>
module attributes {stable_mosaic.version = 11 : i64} {
  func.func @kernel(%arg0: i32, %arg1: memref<64x128xbf16, #tpu.memory_space<vmem>>, %arg2: memref<128x512xbf16, #tpu.memory_space<vmem>>, %arg3: memref<128x512xbf16, #tpu.memory_space<vmem>>, %arg4: memref<1x512xf32, #tpu.memory_space<vmem>>, %arg5: memref<8x128xf32, #tpu.memory_space<vmem>>, %arg6: memref<8x128xf32, #tpu.memory_space<vmem>>, %arg7: memref<8x128xf32, #tpu.memory_space<vmem>>) attributes {dimension_semantics = [#tpu.dimension_semantics<arbitrary>], iteration_bounds = array<i64: 1>, scalar_prefetch = 0 : i64, scratch_operands = 2 : i64, tpu.core_type = #tpu.core_type<tc>, window_params = [{transform_indices = @transform_0, window_bounds = array<i64: 64, 128>}, {pipeline_mode = #tpu.pipeline_mode<synchronous>, transform_indices = @transform_1, window_bounds = array<i64: 128, 512>}, {pipeline_mode = #tpu.pipeline_mode<synchronous>, transform_indices = @transform_2, window_bounds = array<i64: 128, 512>}, {pipeline_mode = #tpu.pipeline_mode<synchronous>, transform_indices = @transform_3, window_bounds = array<i64: 1, 512>}, {pipeline_mode = #tpu.pipeline_mode<synchronous>, transform_indices = @transform_4, window_bounds = array<i64: 8, 128>}]} {
    %c0_i32 = arith.constant 0 : i32
    %0 = arith.cmpi eq, %arg0, %c0_i32 : i32
    %1 = arith.extui %0 : i1 to i32
    %c0_i32_0 = arith.constant 0 : i32
    %2 = arith.cmpi ne, %1, %c0_i32_0 : i32
    scf.if %2 {
      %cst_50 = arith.constant 0.000000e+00 : f32
      %249 = vector.broadcast %cst_50 : f32 to vector<8x128xf32>
      %c0_51 = arith.constant 0 : index
      %c0_52 = arith.constant 0 : index
      %250 = vector.load %arg6[%c0_51, %c0_52] : memref<8x128xf32, #tpu.memory_space<vmem>>, vector<8x128xf32>
      tpu.vector_store %arg6[%c0_51, %c0_52], %249 {strides = array<i32>} : memref<8x128xf32, #tpu.memory_space<vmem>>, vector<8x128xf32>,
      %cst_53 = arith.constant 0.000000e+00 : f32
      %251 = vector.broadcast %cst_53 : f32 to vector<8x128xf32>
      %c0_54 = arith.constant 0 : index
      %c0_55 = arith.constant 0 : index
      %252 = vector.load %arg7[%c0_54, %c0_55] : memref<8x128xf32, #tpu.memory_space<vmem>>, vector<8x128xf32>
      tpu.vector_store %arg7[%c0_54, %c0_55], %251 {strides = array<i32>} : memref<8x128xf32, #tpu.memory_space<vmem>>, vector<8x128xf32>,
    } else {
    }
    %c0 = arith.constant 0 : index
    %c0_1 = arith.constant 0 : index
    %3 = vector.load %arg1[%c0, %c0_1] : memref<64x128xbf16, #tpu.memory_space<vmem>>, vector<64x128xbf16>
    %c0_2 = arith.constant 0 : index
    %c0_3 = arith.constant 0 : index
    %4 = vector.load %arg2[%c0_2, %c0_3] : memref<128x512xbf16, #tpu.memory_space<vmem>>, vector<128x512xbf16>
    %cst = arith.constant dense<0.000000e+00> : vector<64x512xf32>
    %5 = tpu.matmul %3, %4, %cst {dimension_numbers = #tpu.dot_dimension_numbers<[1], [0], [0], [1], [0, 0, 1, 1], [], []>} : vector<64x128xbf16>, vector<128x512xbf16>, vector<64x512xf32> -> vector<64x512xf32>
    %c0_4 = arith.constant 0 : index
    %c0_5 = arith.constant 0 : index
    %6 = vector.load %arg4[%c0_4, %c0_5] : memref<1x512xf32, #tpu.memory_space<vmem>>, vector<1x512xf32>
    %7 = vector.broadcast %6 : vector<1x512xf32> to vector<64x512xf32>
    %8 = arith.addf %5, %7 : vector<64x512xf32>
    %c0_6 = arith.constant 0 : index
    %c0_7 = arith.constant 0 : index
    %9 = vector.load %arg3[%c0_6, %c0_7] : memref<128x512xbf16, #tpu.memory_space<vmem>>, vector<128x512xbf16>
    %c0_8 = arith.constant 0 : index
    %c0_9 = arith.constant 0 : index
    %10 = vector.load %arg6[%c0_8, %c0_9] : memref<8x128xf32, #tpu.memory_space<vmem>>, vector<8x128xf32>
    %c0_10 = arith.constant 0 : index
    %c0_11 = arith.constant 0 : index
    %11 = vector.load %arg7[%c0_10, %c0_11] : memref<8x128xf32, #tpu.memory_space<vmem>>, vector<8x128xf32>
    %12 = vector.extract_strided_slice %8 {offsets = [0, 0], sizes = [8, 512], strides = [1, 1]} : vector<64x512xf32> to vector<8x512xf32>
    %13 = arith.truncf %10 : vector<8x128xf32> to vector<8x128xbf16>
    %cst_12 = arith.constant dense<0.000000e+00> : vector<8x512xf32>
    %14 = tpu.matmul %13, %9, %cst_12 {dimension_numbers = #tpu.dot_dimension_numbers<[1], [0], [0], [1], [0, 0, 1, 1], [], []>} : vector<8x128xbf16>, vector<128x512xbf16>, vector<8x512xf32> -> vector<8x512xf32>
    %15 = arith.addf %12, %14 : vector<8x512xf32>
    %16 = vector.extract_strided_slice %15 {offsets = [0, 0], sizes = [8, 128], strides = [1, 1]} : vector<8x512xf32> to vector<8x128xf32>
    %17 = arith.negf %16 : vector<8x128xf32>
    %18 = math.exp %17 : vector<8x128xf32>
    %cst_13 = arith.constant 1.000000e+00 : f32
    %19 = vector.broadcast %cst_13 : f32 to vector<8x128xf32>
    %20 = arith.addf %19, %18 : vector<8x128xf32>
    %21 = arith.divf %19, %20 : vector<8x128xf32>
    %22 = vector.extract_strided_slice %15 {offsets = [0, 128], sizes = [8, 128], strides = [1, 1]} : vector<8x512xf32> to vector<8x128xf32>
    %23 = arith.negf %22 : vector<8x128xf32>
    %24 = math.exp %23 : vector<8x128xf32>
    %cst_14 = arith.constant 1.000000e+00 : f32
    %25 = vector.broadcast %cst_14 : f32 to vector<8x128xf32>
    %26 = arith.addf %25, %24 : vector<8x128xf32>
    %27 = arith.divf %25, %26 : vector<8x128xf32>
    %28 = vector.extract_strided_slice %15 {offsets = [0, 256], sizes = [8, 128], strides = [1, 1]} : vector<8x512xf32> to vector<8x128xf32>
    %29 = math.tanh %28 : vector<8x128xf32>
    %30 = vector.extract_strided_slice %15 {offsets = [0, 384], sizes = [8, 128], strides = [1, 1]} : vector<8x512xf32> to vector<8x128xf32>
    %31 = arith.negf %30 : vector<8x128xf32>
    %32 = math.exp %31 : vector<8x128xf32>
    %cst_15 = arith.constant 1.000000e+00 : f32
    %33 = vector.broadcast %cst_15 : f32 to vector<8x128xf32>
    %34 = arith.addf %33, %32 : vector<8x128xf32>
    %35 = arith.divf %33, %34 : vector<8x128xf32>
    %36 = arith.mulf %27, %11 : vector<8x128xf32>
    %37 = arith.mulf %21, %29 : vector<8x128xf32>
    %38 = arith.addf %36, %37 : vector<8x128xf32>
    %39 = math.tanh %38 : vector<8x128xf32>
    %40 = arith.mulf %35, %39 : vector<8x128xf32>
    %41 = vector.extract_strided_slice %8 {offsets = [8, 0], sizes = [8, 512], strides = [1, 1]} : vector<64x512xf32> to vector<8x512xf32>
    %42 = arith.truncf %40 : vector<8x128xf32> to vector<8x128xbf16>
    %cst_16 = arith.constant dense<0.000000e+00> : vector<8x512xf32>
    %43 = tpu.matmul %42, %9, %cst_16 {dimension_numbers = #tpu.dot_dimension_numbers<[1], [0], [0], [1], [0, 0, 1, 1], [], []>} : vector<8x128xbf16>, vector<128x512xbf16>, vector<8x512xf32> -> vector<8x512xf32>
    %44 = arith.addf %41, %43 : vector<8x512xf32>
    %45 = vector.extract_strided_slice %44 {offsets = [0, 0], sizes = [8, 128], strides = [1, 1]} : vector<8x512xf32> to vector<8x128xf32>
    %46 = arith.negf %45 : vector<8x128xf32>
    %47 = math.exp %46 : vector<8x128xf32>
    %cst_17 = arith.constant 1.000000e+00 : f32
    %48 = vector.broadcast %cst_17 : f32 to vector<8x128xf32>
    %49 = arith.addf %48, %47 : vector<8x128xf32>
    %50 = arith.divf %48, %49 : vector<8x128xf32>
    %51 = vector.extract_strided_slice %44 {offsets = [0, 128], sizes = [8, 128], strides = [1, 1]} : vector<8x512xf32> to vector<8x128xf32>
    %52 = arith.negf %51 : vector<8x128xf32>
    %53 = math.exp %52 : vector<8x128xf32>
    %cst_18 = arith.constant 1.000000e+00 : f32
    %54 = vector.broadcast %cst_18 : f32 to vector<8x128xf32>
    %55 = arith.addf %54, %53 : vector<8x128xf32>
    %56 = arith.divf %54, %55 : vector<8x128xf32>
    %57 = vector.extract_strided_slice %44 {offsets = [0, 256], sizes = [8, 128], strides = [1, 1]} : vector<8x512xf32> to vector<8x128xf32>
    %58 = math.tanh %57 : vector<8x128xf32>
    %59 = vector.extract_strided_slice %44 {offsets = [0, 384], sizes = [8, 128], strides = [1, 1]} : vector<8x512xf32> to vector<8x128xf32>
    %60 = arith.negf %59 : vector<8x128xf32>
    %61 = math.exp %60 : vector<8x128xf32>
    %cst_19 = arith.constant 1.000000e+00 : f32
    %62 = vector.broadcast %cst_19 : f32 to vector<8x128xf32>
    %63 = arith.addf %62, %61 : vector<8x128xf32>
    %64 = arith.divf %62, %63 : vector<8x128xf32>
    %65 = arith.mulf %56, %38 : vector<8x128xf32>
    %66 = arith.mulf %50, %58 : vector<8x128xf32>
    %67 = arith.addf %65, %66 : vector<8x128xf32>
    %68 = math.tanh %67 : vector<8x128xf32>
    %69 = arith.mulf %64, %68 : vector<8x128xf32>
    %70 = vector.extract_strided_slice %8 {offsets = [16, 0], sizes = [8, 512], strides = [1, 1]} : vector<64x512xf32> to vector<8x512xf32>
    %71 = arith.truncf %69 : vector<8x128xf32> to vector<8x128xbf16>
    %cst_20 = arith.constant dense<0.000000e+00> : vector<8x512xf32>
    %72 = tpu.matmul %71, %9, %cst_20 {dimension_numbers = #tpu.dot_dimension_numbers<[1], [0], [0], [1], [0, 0, 1, 1], [], []>} : vector<8x128xbf16>, vector<128x512xbf16>, vector<8x512xf32> -> vector<8x512xf32>
    %73 = arith.addf %70, %72 : vector<8x512xf32>
    %74 = vector.extract_strided_slice %73 {offsets = [0, 0], sizes = [8, 128], strides = [1, 1]} : vector<8x512xf32> to vector<8x128xf32>
    %75 = arith.negf %74 : vector<8x128xf32>
    %76 = math.exp %75 : vector<8x128xf32>
    %cst_21 = arith.constant 1.000000e+00 : f32
    %77 = vector.broadcast %cst_21 : f32 to vector<8x128xf32>
    %78 = arith.addf %77, %76 : vector<8x128xf32>
    %79 = arith.divf %77, %78 : vector<8x128xf32>
    %80 = vector.extract_strided_slice %73 {offsets = [0, 128], sizes = [8, 128], strides = [1, 1]} : vector<8x512xf32> to vector<8x128xf32>
    %81 = arith.negf %80 : vector<8x128xf32>
    %82 = math.exp %81 : vector<8x128xf32>
    %cst_22 = arith.constant 1.000000e+00 : f32
    %83 = vector.broadcast %cst_22 : f32 to vector<8x128xf32>
    %84 = arith.addf %83, %82 : vector<8x128xf32>
    %85 = arith.divf %83, %84 : vector<8x128xf32>
    %86 = vector.extract_strided_slice %73 {offsets = [0, 256], sizes = [8, 128], strides = [1, 1]} : vector<8x512xf32> to vector<8x128xf32>
    %87 = math.tanh %86 : vector<8x128xf32>
    %88 = vector.extract_strided_slice %73 {offsets = [0, 384], sizes = [8, 128], strides = [1, 1]} : vector<8x512xf32> to vector<8x128xf32>
    %89 = arith.negf %88 : vector<8x128xf32>
    %90 = math.exp %89 : vector<8x128xf32>
    %cst_23 = arith.constant 1.000000e+00 : f32
    %91 = vector.broadcast %cst_23 : f32 to vector<8x128xf32>
    %92 = arith.addf %91, %90 : vector<8x128xf32>
    %93 = arith.divf %91, %92 : vector<8x128xf32>
    %94 = arith.mulf %85, %67 : vector<8x128xf32>
    %95 = arith.mulf %79, %87 : vector<8x128xf32>
    %96 = arith.addf %94, %95 : vector<8x128xf32>
    %97 = math.tanh %96 : vector<8x128xf32>
    %98 = arith.mulf %93, %97 : vector<8x128xf32>
    %99 = vector.extract_strided_slice %8 {offsets = [24, 0], sizes = [8, 512], strides = [1, 1]} : vector<64x512xf32> to vector<8x512xf32>
    %100 = arith.truncf %98 : vector<8x128xf32> to vector<8x128xbf16>
    %cst_24 = arith.constant dense<0.000000e+00> : vector<8x512xf32>
    %101 = tpu.matmul %100, %9, %cst_24 {dimension_numbers = #tpu.dot_dimension_numbers<[1], [0], [0], [1], [0, 0, 1, 1], [], []>} : vector<8x128xbf16>, vector<128x512xbf16>, vector<8x512xf32> -> vector<8x512xf32>
    %102 = arith.addf %99, %101 : vector<8x512xf32>
    %103 = vector.extract_strided_slice %102 {offsets = [0, 0], sizes = [8, 128], strides = [1, 1]} : vector<8x512xf32> to vector<8x128xf32>
    %104 = arith.negf %103 : vector<8x128xf32>
    %105 = math.exp %104 : vector<8x128xf32>
    %cst_25 = arith.constant 1.000000e+00 : f32
    %106 = vector.broadcast %cst_25 : f32 to vector<8x128xf32>
    %107 = arith.addf %106, %105 : vector<8x128xf32>
    %108 = arith.divf %106, %107 : vector<8x128xf32>
    %109 = vector.extract_strided_slice %102 {offsets = [0, 128], sizes = [8, 128], strides = [1, 1]} : vector<8x512xf32> to vector<8x128xf32>
    %110 = arith.negf %109 : vector<8x128xf32>
    %111 = math.exp %110 : vector<8x128xf32>
    %cst_26 = arith.constant 1.000000e+00 : f32
    %112 = vector.broadcast %cst_26 : f32 to vector<8x128xf32>
    %113 = arith.addf %112, %111 : vector<8x128xf32>
    %114 = arith.divf %112, %113 : vector<8x128xf32>
    %115 = vector.extract_strided_slice %102 {offsets = [0, 256], sizes = [8, 128], strides = [1, 1]} : vector<8x512xf32> to vector<8x128xf32>
    %116 = math.tanh %115 : vector<8x128xf32>
    %117 = vector.extract_strided_slice %102 {offsets = [0, 384], sizes = [8, 128], strides = [1, 1]} : vector<8x512xf32> to vector<8x128xf32>
    %118 = arith.negf %117 : vector<8x128xf32>
    %119 = math.exp %118 : vector<8x128xf32>
    %cst_27 = arith.constant 1.000000e+00 : f32
    %120 = vector.broadcast %cst_27 : f32 to vector<8x128xf32>
    %121 = arith.addf %120, %119 : vector<8x128xf32>
    %122 = arith.divf %120, %121 : vector<8x128xf32>
    %123 = arith.mulf %114, %96 : vector<8x128xf32>
    %124 = arith.mulf %108, %116 : vector<8x128xf32>
    %125 = arith.addf %123, %124 : vector<8x128xf32>
    %126 = math.tanh %125 : vector<8x128xf32>
    %127 = arith.mulf %122, %126 : vector<8x128xf32>
    %128 = vector.extract_strided_slice %8 {offsets = [32, 0], sizes = [8, 512], strides = [1, 1]} : vector<64x512xf32> to vector<8x512xf32>
    %129 = arith.truncf %127 : vector<8x128xf32> to vector<8x128xbf16>
    %cst_28 = arith.constant dense<0.000000e+00> : vector<8x512xf32>
    %130 = tpu.matmul %129, %9, %cst_28 {dimension_numbers = #tpu.dot_dimension_numbers<[1], [0], [0], [1], [0, 0, 1, 1], [], []>} : vector<8x128xbf16>, vector<128x512xbf16>, vector<8x512xf32> -> vector<8x512xf32>
    %131 = arith.addf %128, %130 : vector<8x512xf32>
    %132 = vector.extract_strided_slice %131 {offsets = [0, 0], sizes = [8, 128], strides = [1, 1]} : vector<8x512xf32> to vector<8x128xf32>
    %133 = arith.negf %132 : vector<8x128xf32>
    %134 = math.exp %133 : vector<8x128xf32>
    %cst_29 = arith.constant 1.000000e+00 : f32
    %135 = vector.broadcast %cst_29 : f32 to vector<8x128xf32>
    %136 = arith.addf %135, %134 : vector<8x128xf32>
    %137 = arith.divf %135, %136 : vector<8x128xf32>
    %138 = vector.extract_strided_slice %131 {offsets = [0, 128], sizes = [8, 128], strides = [1, 1]} : vector<8x512xf32> to vector<8x128xf32>
    %139 = arith.negf %138 : vector<8x128xf32>
    %140 = math.exp %139 : vector<8x128xf32>
    %cst_30 = arith.constant 1.000000e+00 : f32
    %141 = vector.broadcast %cst_30 : f32 to vector<8x128xf32>
    %142 = arith.addf %141, %140 : vector<8x128xf32>
    %143 = arith.divf %141, %142 : vector<8x128xf32>
    %144 = vector.extract_strided_slice %131 {offsets = [0, 256], sizes = [8, 128], strides = [1, 1]} : vector<8x512xf32> to vector<8x128xf32>
    %145 = math.tanh %144 : vector<8x128xf32>
    %146 = vector.extract_strided_slice %131 {offsets = [0, 384], sizes = [8, 128], strides = [1, 1]} : vector<8x512xf32> to vector<8x128xf32>
    %147 = arith.negf %146 : vector<8x128xf32>
    %148 = math.exp %147 : vector<8x128xf32>
    %cst_31 = arith.constant 1.000000e+00 : f32
    %149 = vector.broadcast %cst_31 : f32 to vector<8x128xf32>
    %150 = arith.addf %149, %148 : vector<8x128xf32>
    %151 = arith.divf %149, %150 : vector<8x128xf32>
    %152 = arith.mulf %143, %125 : vector<8x128xf32>
    %153 = arith.mulf %137, %145 : vector<8x128xf32>
    %154 = arith.addf %152, %153 : vector<8x128xf32>
    %155 = math.tanh %154 : vector<8x128xf32>
    %156 = arith.mulf %151, %155 : vector<8x128xf32>
    %157 = vector.extract_strided_slice %8 {offsets = [40, 0], sizes = [8, 512], strides = [1, 1]} : vector<64x512xf32> to vector<8x512xf32>
    %158 = arith.truncf %156 : vector<8x128xf32> to vector<8x128xbf16>
    %cst_32 = arith.constant dense<0.000000e+00> : vector<8x512xf32>
    %159 = tpu.matmul %158, %9, %cst_32 {dimension_numbers = #tpu.dot_dimension_numbers<[1], [0], [0], [1], [0, 0, 1, 1], [], []>} : vector<8x128xbf16>, vector<128x512xbf16>, vector<8x512xf32> -> vector<8x512xf32>
    %160 = arith.addf %157, %159 : vector<8x512xf32>
    %161 = vector.extract_strided_slice %160 {offsets = [0, 0], sizes = [8, 128], strides = [1, 1]} : vector<8x512xf32> to vector<8x128xf32>
    %162 = arith.negf %161 : vector<8x128xf32>
    %163 = math.exp %162 : vector<8x128xf32>
    %cst_33 = arith.constant 1.000000e+00 : f32
    %164 = vector.broadcast %cst_33 : f32 to vector<8x128xf32>
    %165 = arith.addf %164, %163 : vector<8x128xf32>
    %166 = arith.divf %164, %165 : vector<8x128xf32>
    %167 = vector.extract_strided_slice %160 {offsets = [0, 128], sizes = [8, 128], strides = [1, 1]} : vector<8x512xf32> to vector<8x128xf32>
    %168 = arith.negf %167 : vector<8x128xf32>
    %169 = math.exp %168 : vector<8x128xf32>
    %cst_34 = arith.constant 1.000000e+00 : f32
    %170 = vector.broadcast %cst_34 : f32 to vector<8x128xf32>
    %171 = arith.addf %170, %169 : vector<8x128xf32>
    %172 = arith.divf %170, %171 : vector<8x128xf32>
    %173 = vector.extract_strided_slice %160 {offsets = [0, 256], sizes = [8, 128], strides = [1, 1]} : vector<8x512xf32> to vector<8x128xf32>
    %174 = math.tanh %173 : vector<8x128xf32>
    %175 = vector.extract_strided_slice %160 {offsets = [0, 384], sizes = [8, 128], strides = [1, 1]} : vector<8x512xf32> to vector<8x128xf32>
    %176 = arith.negf %175 : vector<8x128xf32>
    %177 = math.exp %176 : vector<8x128xf32>
    %cst_35 = arith.constant 1.000000e+00 : f32
    %178 = vector.broadcast %cst_35 : f32 to vector<8x128xf32>
    %179 = arith.addf %178, %177 : vector<8x128xf32>
    %180 = arith.divf %178, %179 : vector<8x128xf32>
    %181 = arith.mulf %172, %154 : vector<8x128xf32>
    %182 = arith.mulf %166, %174 : vector<8x128xf32>
    %183 = arith.addf %181, %182 : vector<8x128xf32>
    %184 = math.tanh %183 : vector<8x128xf32>
    %185 = arith.mulf %180, %184 : vector<8x128xf32>
    %186 = vector.extract_strided_slice %8 {offsets = [48, 0], sizes = [8, 512], strides = [1, 1]} : vector<64x512xf32> to vector<8x512xf32>
    %187 = arith.truncf %185 : vector<8x128xf32> to vector<8x128xbf16>
    %cst_36 = arith.constant dense<0.000000e+00> : vector<8x512xf32>
    %188 = tpu.matmul %187, %9, %cst_36 {dimension_numbers = #tpu.dot_dimension_numbers<[1], [0], [0], [1], [0, 0, 1, 1], [], []>} : vector<8x128xbf16>, vector<128x512xbf16>, vector<8x512xf32> -> vector<8x512xf32>
    %189 = arith.addf %186, %188 : vector<8x512xf32>
    %190 = vector.extract_strided_slice %189 {offsets = [0, 0], sizes = [8, 128], strides = [1, 1]} : vector<8x512xf32> to vector<8x128xf32>
    %191 = arith.negf %190 : vector<8x128xf32>
    %192 = math.exp %191 : vector<8x128xf32>
    %cst_37 = arith.constant 1.000000e+00 : f32
    %193 = vector.broadcast %cst_37 : f32 to vector<8x128xf32>
    %194 = arith.addf %193, %192 : vector<8x128xf32>
    %195 = arith.divf %193, %194 : vector<8x128xf32>
    %196 = vector.extract_strided_slice %189 {offsets = [0, 128], sizes = [8, 128], strides = [1, 1]} : vector<8x512xf32> to vector<8x128xf32>
    %197 = arith.negf %196 : vector<8x128xf32>
    %198 = math.exp %197 : vector<8x128xf32>
    %cst_38 = arith.constant 1.000000e+00 : f32
    %199 = vector.broadcast %cst_38 : f32 to vector<8x128xf32>
    %200 = arith.addf %199, %198 : vector<8x128xf32>
    %201 = arith.divf %199, %200 : vector<8x128xf32>
    %202 = vector.extract_strided_slice %189 {offsets = [0, 256], sizes = [8, 128], strides = [1, 1]} : vector<8x512xf32> to vector<8x128xf32>
    %203 = math.tanh %202 : vector<8x128xf32>
    %204 = vector.extract_strided_slice %189 {offsets = [0, 384], sizes = [8, 128], strides = [1, 1]} : vector<8x512xf32> to vector<8x128xf32>
    %205 = arith.negf %204 : vector<8x128xf32>
    %206 = math.exp %205 : vector<8x128xf32>
    %cst_39 = arith.constant 1.000000e+00 : f32
    %207 = vector.broadcast %cst_39 : f32 to vector<8x128xf32>
    %208 = arith.addf %207, %206 : vector<8x128xf32>
    %209 = arith.divf %207, %208 : vector<8x128xf32>
    %210 = arith.mulf %201, %183 : vector<8x128xf32>
    %211 = arith.mulf %195, %203 : vector<8x128xf32>
    %212 = arith.addf %210, %211 : vector<8x128xf32>
    %213 = math.tanh %212 : vector<8x128xf32>
    %214 = arith.mulf %209, %213 : vector<8x128xf32>
    %215 = vector.extract_strided_slice %8 {offsets = [56, 0], sizes = [8, 512], strides = [1, 1]} : vector<64x512xf32> to vector<8x512xf32>
    %216 = arith.truncf %214 : vector<8x128xf32> to vector<8x128xbf16>
    %cst_40 = arith.constant dense<0.000000e+00> : vector<8x512xf32>
    %217 = tpu.matmul %216, %9, %cst_40 {dimension_numbers = #tpu.dot_dimension_numbers<[1], [0], [0], [1], [0, 0, 1, 1], [], []>} : vector<8x128xbf16>, vector<128x512xbf16>, vector<8x512xf32> -> vector<8x512xf32>
    %218 = arith.addf %215, %217 : vector<8x512xf32>
    %219 = vector.extract_strided_slice %218 {offsets = [0, 0], sizes = [8, 128], strides = [1, 1]} : vector<8x512xf32> to vector<8x128xf32>
    %220 = arith.negf %219 : vector<8x128xf32>
    %221 = math.exp %220 : vector<8x128xf32>
    %cst_41 = arith.constant 1.000000e+00 : f32
    %222 = vector.broadcast %cst_41 : f32 to vector<8x128xf32>
    %223 = arith.addf %222, %221 : vector<8x128xf32>
    %224 = arith.divf %222, %223 : vector<8x128xf32>
    %225 = vector.extract_strided_slice %218 {offsets = [0, 128], sizes = [8, 128], strides = [1, 1]} : vector<8x512xf32> to vector<8x128xf32>
    %226 = arith.negf %225 : vector<8x128xf32>
    %227 = math.exp %226 : vector<8x128xf32>
    %cst_42 = arith.constant 1.000000e+00 : f32
    %228 = vector.broadcast %cst_42 : f32 to vector<8x128xf32>
    %229 = arith.addf %228, %227 : vector<8x128xf32>
    %230 = arith.divf %228, %229 : vector<8x128xf32>
    %231 = vector.extract_strided_slice %218 {offsets = [0, 256], sizes = [8, 128], strides = [1, 1]} : vector<8x512xf32> to vector<8x128xf32>
    %232 = math.tanh %231 : vector<8x128xf32>
    %233 = vector.extract_strided_slice %218 {offsets = [0, 384], sizes = [8, 128], strides = [1, 1]} : vector<8x512xf32> to vector<8x128xf32>
    %234 = arith.negf %233 : vector<8x128xf32>
    %235 = math.exp %234 : vector<8x128xf32>
    %cst_43 = arith.constant 1.000000e+00 : f32
    %236 = vector.broadcast %cst_43 : f32 to vector<8x128xf32>
    %237 = arith.addf %236, %235 : vector<8x128xf32>
    %238 = arith.divf %236, %237 : vector<8x128xf32>
    %239 = arith.mulf %230, %212 : vector<8x128xf32>
    %240 = arith.mulf %224, %232 : vector<8x128xf32>
    %241 = arith.addf %239, %240 : vector<8x128xf32>
    %242 = math.tanh %241 : vector<8x128xf32>
    %243 = arith.mulf %238, %242 : vector<8x128xf32>
    %c0_44 = arith.constant 0 : index
    %c0_45 = arith.constant 0 : index
    %244 = vector.load %arg6[%c0_44, %c0_45] : memref<8x128xf32, #tpu.memory_space<vmem>>, vector<8x128xf32>
    tpu.vector_store %arg6[%c0_44, %c0_45], %243 {strides = array<i32>} : memref<8x128xf32, #tpu.memory_space<vmem>>, vector<8x128xf32>,
    %c0_46 = arith.constant 0 : index
    %c0_47 = arith.constant 0 : index
    %245 = vector.load %arg7[%c0_46, %c0_47] : memref<8x128xf32, #tpu.memory_space<vmem>>, vector<8x128xf32>
    tpu.vector_store %arg7[%c0_46, %c0_47], %241 {strides = array<i32>} : memref<8x128xf32, #tpu.memory_space<vmem>>, vector<8x128xf32>,
    %c0_i32_48 = arith.constant 0 : i32
    %246 = arith.cmpi eq, %arg0, %c0_i32_48 : i32
    %247 = arith.extui %246 : i1 to i32
    %c0_i32_49 = arith.constant 0 : i32
    %248 = arith.cmpi ne, %247, %c0_i32_49 : i32
    scf.if %248 {
      %c0_50 = arith.constant 0 : index
      %c0_51 = arith.constant 0 : index
      %249 = vector.load %arg5[%c0_50, %c0_51] : memref<8x128xf32, #tpu.memory_space<vmem>>, vector<8x128xf32>
      tpu.vector_store %arg5[%c0_50, %c0_51], %243 {strides = array<i32>} : memref<8x128xf32, #tpu.memory_space<vmem>>, vector<8x128xf32>,
    } else {
    }
    return
  }
  func.func @transform_0(%arg0: i32) -> (i32, i32) {
    %c0_i32 = arith.constant 0 : i32
    %c0_i32_0 = arith.constant 0 : i32
    return %arg0, %c0_i32 : i32, i32
  }
  func.func @transform_1(%arg0: i32) -> (i32, i32) {
    %c0_i32 = arith.constant 0 : i32
    %c0_i32_0 = arith.constant 0 : i32
    %c0_i32_1 = arith.constant 0 : i32
    return %c0_i32, %c0_i32_0 : i32, i32
  }
  func.func @transform_2(%arg0: i32) -> (i32, i32) {
    %c0_i32 = arith.constant 0 : i32
    %c0_i32_0 = arith.constant 0 : i32
    %c0_i32_1 = arith.constant 0 : i32
    return %c0_i32, %c0_i32_0 : i32, i32
  }
  func.func @transform_3(%arg0: i32) -> (i32, i32) {
    %c0_i32 = arith.constant 0 : i32
    %c0_i32_0 = arith.constant 0 : i32
    %c0_i32_1 = arith.constant 0 : i32
    return %c0_i32, %c0_i32_0 : i32, i32
  }
  func.func @transform_4(%arg0: i32) -> (i32, i32) {
    %c0_i32 = arith.constant 0 : i32
    %c0_i32_0 = arith.constant 0 : i32
    %c0_i32_1 = arith.constant 0 : i32
    return %c0_i32, %c0_i32_0 : i32, i32
  }
}

</mosaic_0001>

<bundles_post_ra>
// kernel: tpu_custom_call.1
= control target key start
LH: loop header
LB: loop body
LE: loop exit
PB: predicated region body
PF: predicated region fallthrough
CT: control target
= control target key end

     0   :  { %9 = vsyncpa [#allocation5], 0  ;;  %s2616_s0 = inlined_call_operand.hbm [shape: bf16[64,128], index: 0, kind: input, shape index: {}]   ;;  %s2617_s1 = inlined_call_operand.hbm [shape: bf16[128,512], index: 1, kind: input, shape index: {}]   ;;  %s2618_s2 = inlined_call_operand.hbm [shape: bf16[128,512], index: 2, kind: input, shape index: {}]   ;;  %s2619_s3 = inlined_call_operand.vmem [shape: f32[1,512], index: 3, kind: input, shape index: {}]   ;;  %s2620_s4 = inlined_call_operand.hbm [shape: f32[8,128], index: 4, kind: output, shape index: {}]  }
   0x1   :  { %10 = vsyncpa [#allocation8], 0 }
   0x2   :  { %11 = vsyncpa [#allocation6], 0  ;;  %s2018_s15 = smov [#allocation7]   ;;  %s1924_s19 = scalar_lea.hbm %s2617_s1, 4096 }
   0x3   :  { %s29_s16 = sshll.u32 %s2018_s15, 4  ;;  %p1925_p0 = scmp.ne.s32.totalorder %s2617_s1, %s1924_s19  ;;  %s30_s16 = int_to_ptr.vmem [resolvable:$true] %s29_s16 }
   0x4   :  { %p1928_p1 = scmp.lt.u32.totalorder %s1924_s19, %s2617_s1 }
   0x6   :  { %p1930_p2 = pnand %p1928_p1, %p1925_p0 }
   0x8   :  { %1933 = shalt.err (!%p1930_p2)
}
   0x9   :  { %s1934_s24 = scalar_lea.vmem %s30_s16, 4096  ;;  %p1939_p4 = scmp.lt.s32.totalorder %s30_s16, %s30_s16 }
   0xa   :  { %p1935_p3 = scmp.ne.s32.totalorder %s30_s16, %s1934_s24  ;;  %p1940_p5 = scmp.lt.s32.totalorder %s1934_s24, %s1934_s24 }
   0xc   :  { %p1941_p6 = por %p1940_p5, %p1939_p4 }
   0xe   :  { %p1942_p7 = pnand %p1941_p6, %p1935_p3 }
  0x10   :  { %1945 = shalt.err (!%p1942_p7)
}
  0x11   :  { %s2019_s25 = smov 256   ;;  %s2020_s26 = smov 16  }
  0x12   :  { %35 = dma.hbm_to_vmem [thread:$0]  %s2617_s1, 4096, %s30_s16, [#allocation8], %s2019_s25, %s2019_s25, %s2020_s26  }
  0x13   :  { %s2021_s29 = smov [#allocation4]   ;;  %s1946_s7 = scalar_lea.hbm %s2616_s0, 512 }
  0x14   :  { %s17_s30 = sshll.u32 %s2021_s29, 4  ;;  %p1947_p8 = scmp.ne.s32.totalorder %s2616_s0, %s1946_s7  ;;  %s18_s30 = int_to_ptr.vmem [resolvable:$true] %s17_s30 }
  0x15   :  { %p1950_p9 = scmp.lt.u32.totalorder %s1946_s7, %s2616_s0 }
  0x17   :  { %p1952_p10 = pnand %p1950_p9, %p1947_p8 }
  0x19   :  { %1955 = shalt.err (!%p1952_p10)
}
  0x1a   :  { %s1956_s12 = scalar_lea.vmem %s18_s30, 512  ;;  %p1961_p12 = scmp.lt.s32.totalorder %s18_s30, %s18_s30 }
  0x1b   :  { %p1957_p11 = scmp.ne.s32.totalorder %s18_s30, %s1956_s12  ;;  %p1962_p13 = scmp.lt.s32.totalorder %s1956_s12, %s1956_s12 }
  0x1d   :  { %p1963_p0 = por %p1962_p13, %p1961_p12 }
  0x1f   :  { %p1964_p1 = pnand %p1963_p0, %p1957_p11 }
  0x21   :  { %1967 = shalt.err (!%p1964_p1)
}
  0x22   :  { %s2022_s1 = smov 64   ;;  %s2023_s13 = smov 4  }
  0x23   :  { %23 = dma.hbm_to_vmem [thread:$0]  %s2616_s0, 512, %s18_s30, [#allocation5], %s2022_s1, %s2022_s1, %s2023_s13  }
  0x24   :  { %s2024_s16 = smov [#allocation9]   ;;  %s1968_s20 = scalar_lea.hbm %s2618_s2, 4096 }
  0x25   :  { %s41_s17 = sshll.u32 %s2024_s16, 4  ;;  %p1969_p2 = scmp.ne.s32.totalorder %s2618_s2, %s1968_s20  ;;  %s42_s17 = int_to_ptr.vmem [resolvable:$true] %s41_s17 }
  0x26   :  { %p1972_p3 = scmp.lt.u32.totalorder %s1968_s20, %s2618_s2 }
  0x28   :  { %p1974_p4 = pnand %p1972_p3, %p1969_p2 }
  0x2a   :  { %1977 = shalt.err (!%p1974_p4)
}
  0x2b   :  { %s1978_s27 = scalar_lea.vmem %s42_s17, 4096  ;;  %p1983_p6 = scmp.lt.s32.totalorder %s42_s17, %s42_s17 }
  0x2c   :  { %p1979_p5 = scmp.ne.s32.totalorder %s42_s17, %s1978_s27  ;;  %p1984_p7 = scmp.lt.s32.totalorder %s1978_s27, %s1978_s27 }
  0x2e   :  { %p1985_p8 = por %p1984_p7, %p1983_p6 }
  0x30   :  { %p1986_p9 = pnand %p1985_p8, %p1979_p5 }
  0x32   :  { %1989 = shalt.err (!%p1986_p9)
}
  0x33   :  { %47 = dma.hbm_to_vmem [thread:$0]  %s2618_s2, 4096, %s42_s17, [#allocation8], %s2019_s25, %s2019_s25, %s2020_s26  }
  0x34   :  { %2012 = dma.done.wait [#allocation5], 512  }
  0x35   :  { %2013 = vsyncadd [#allocation5], 4294966784 }
  0x36   :  { %2014 = dma.done.wait [#allocation8], 8192  }
  0x37   :  { %2015 = vsyncadd [#allocation8], 4294959104  ;;  %v2621_v0 = vmov 0   ;;  %v1664_v1 = vld [vmem:[#allocation7 + $0x4] ss:$16 sps:$4 sm:$0xff]   ;;  %v1725_v44 = vld [vmem:[#allocation4 + $0x8] sm:$0xff]  }
  0x38   :  { %344 = vmatprep.mubr.bf16.mxu0 %v2621_v0  ;;  %417 = vmatprep.mubr.bf16.mxu1 %v2621_v0  ;;  %v1666_v2 = vld [vmem:[#allocation7 + $0xc] ss:$16 sps:$4 sm:$0xff]   ;;  %v1668_v3 = vld [vmem:[#allocation7] ss:$16 sps:$4 sm:$0xff]   ;;  %v1669_v4 = vld [vmem:[#allocation7 + $0x8] ss:$16 sps:$4 sm:$0xff]  }
  0x39   :  { %312 = vmatprep.subr.bf16.mxu0 %v1664_v1  ;;  %385 = vmatprep.subr.bf16.mxu1 %v1666_v2  ;;  %v1670_v5 = vld [vmem:[#allocation7 + $0x24] ss:$16 sps:$4 sm:$0xff]   ;;  %v1672_v6 = vld [vmem:[#allocation7 + $0x2c] ss:$16 sps:$4 sm:$0xff]   ;;  %v1674_v7 = vld [vmem:[#allocation7 + $0x20] ss:$16 sps:$4 sm:$0xff]  }
  0x3a   :  { %313 = vmatpush1.bf16.msra.mxu0 %v1668_v3  ;;  %386 = vmatpush1.bf16.msra.mxu1 %v1669_v4  ;;  %v1675_v8 = vld [vmem:[#allocation7 + $0x28] ss:$16 sps:$4 sm:$0xff]   ;;  %v1676_v9 = vld [vmem:[#allocation7 + $0x44] ss:$16 sps:$4 sm:$0xff]   ;;  %v1678_v10 = vld [vmem:[#allocation7 + $0x4c] ss:$16 sps:$4 sm:$0xff]  }
  0x3b   :  { %314 = vmatprep.subr.bf16.mxu0 %v1670_v5  ;;  %387 = vmatprep.subr.bf16.mxu1 %v1672_v6  ;;  %v1680_v11 = vld [vmem:[#allocation7 + $0x40] ss:$16 sps:$4 sm:$0xff]   ;;  %v1681_v12 = vld [vmem:[#allocation7 + $0x48] ss:$16 sps:$4 sm:$0xff]   ;;  %v1682_v13 = vld [vmem:[#allocation7 + $0x64] ss:$16 sps:$4 sm:$0xff]  }
  0x3c   :  { %v1684_v14 = vld [vmem:[#allocation7 + $0x6c] ss:$16 sps:$4 sm:$0xff]   ;;  %v1686_v15 = vld [vmem:[#allocation7 + $0x60] ss:$16 sps:$4 sm:$0xff]   ;;  %v1687_v16 = vld [vmem:[#allocation7 + $0x68] ss:$16 sps:$4 sm:$0xff]  }
  0x3d   :  { %v1688_v17 = vld [vmem:[#allocation7 + $0x84] ss:$16 sps:$4 sm:$0xff]   ;;  %v1690_v18 = vld [vmem:[#allocation7 + $0x8c] ss:$16 sps:$4 sm:$0xff]   ;;  %v1692_v19 = vld [vmem:[#allocation7 + $0x80] ss:$16 sps:$4 sm:$0xff]  }
  0x3e   :  { %315 = vmatpush1.bf16.msra.mxu0 %v1674_v7  ;;  %388 = vmatpush1.bf16.msra.mxu1 %v1675_v8  ;;  %v1693_v20 = vld [vmem:[#allocation7 + $0x88] ss:$16 sps:$4 sm:$0xff]   ;;  %v1694_v21 = vld [vmem:[#allocation7 + $0xa4] ss:$16 sps:$4 sm:$0xff]   ;;  %v1696_v22 = vld [vmem:[#allocation7 + $0xac] ss:$16 sps:$4 sm:$0xff]   ;;  %v108_v7 = vlaneseq }
  0x3f   :  { %316 = vmatprep.subr.bf16.mxu0 %v1676_v9  ;;  %389 = vmatprep.subr.bf16.mxu1 %v1678_v10  ;;  %v1698_v23 = vld [vmem:[#allocation7 + $0xa0] ss:$16 sps:$4 sm:$0xff]   ;;  %v1699_v24 = vld [vmem:[#allocation7 + $0xa8] ss:$16 sps:$4 sm:$0xff]   ;;  %v1700_v25 = vld [vmem:[#allocation7 + $0xc4] ss:$16 sps:$4 sm:$0xff]  }
  0x40   :  { %v1702_v26 = vld [vmem:[#allocation7 + $0xcc] ss:$16 sps:$4 sm:$0xff]   ;;  %v1704_v27 = vld [vmem:[#allocation7 + $0xc0] ss:$16 sps:$4 sm:$0xff]   ;;  %v1705_v28 = vld [vmem:[#allocation7 + $0xc8] ss:$16 sps:$4 sm:$0xff]  }
  0x41   :  { %v1706_v29 = vld [vmem:[#allocation7 + $0xe4] ss:$16 sps:$4 sm:$0xff]   ;;  %v1708_v30 = vld [vmem:[#allocation7 + $0xec] ss:$16 sps:$4 sm:$0xff]   ;;  %v1710_v31 = vld [vmem:[#allocation7 + $0xe0] ss:$16 sps:$4 sm:$0xff]  }
  0x42   :  { %317 = vmatpush1.bf16.msra.mxu0 %v1680_v11  ;;  %390 = vmatpush1.bf16.msra.mxu1 %v1681_v12  ;;  %v1711_v32 = vld [vmem:[#allocation7 + $0xe8] ss:$16 sps:$4 sm:$0xff]   ;;  %v2097_v33 = vld [vmem:[#allocation9 + $0x4] ss:$16 sps:$4 sm:$0xff]   ;;  %v2099_v34 = vld [vmem:[#allocation9 + $0xc] ss:$16 sps:$4 sm:$0xff]  }
  0x43   :  { %318 = vmatprep.subr.bf16.mxu0 %v1682_v13  ;;  %391 = vmatprep.subr.bf16.mxu1 %v1684_v14  ;;  %v1712_v35 = vld [vmem:[#allocation4] sm:$0xff]   ;;  %v2103_v37 = vld [vmem:[#allocation9 + $0x8] ss:$16 sps:$4 sm:$0xff]   ;;  %v2109_v39 = vld [vmem:[#allocation9 + $0x2c] ss:$16 sps:$4 sm:$0xff]   ;;  %v2026_v6 = vmov 0.0|0.0  }
  0x44   :  { %v2101_v36 = vld [vmem:[#allocation9] ss:$16 sps:$4 sm:$0xff]   ;;  %v2107_v38 = vld [vmem:[#allocation9 + $0x24] ss:$16 sps:$4 sm:$0xff]   ;;  %v2115_v41 = vld [vmem:[#allocation9 + $0x28] ss:$16 sps:$4 sm:$0xff]  }
  0x45   :  { %v2111_v40 = vld [vmem:[#allocation9 + $0x20] ss:$16 sps:$4 sm:$0xff]   ;;  %v2119_v42 = vld [vmem:[#allocation9 + $0x44] ss:$16 sps:$4 sm:$0xff]   ;;  %v2121_v43 = vld [vmem:[#allocation9 + $0x4c] ss:$16 sps:$4 sm:$0xff]  }
  0x46   :  { %319 = vmatpush1.bf16.msra.mxu0 %v1686_v15  ;;  %392 = vmatpush1.bf16.msra.mxu1 %v1687_v16  ;;  %v2125_v45 = vld [vmem:[#allocation9 + $0x40] ss:$16 sps:$4 sm:$0xff]   ;;  %v2127_v46 = vld [vmem:[#allocation9 + $0x48] ss:$16 sps:$4 sm:$0xff]   ;;  %v2131_v47 = vld [vmem:[#allocation9 + $0x64] ss:$16 sps:$4 sm:$0xff]  }
  0x47   :  { %320 = vmatprep.subr.bf16.mxu0 %v1688_v17  ;;  %393 = vmatprep.subr.bf16.mxu1 %v1690_v18  ;;  %v2135_v48 = vld [vmem:[#allocation9 + $0x6c] ss:$16 sps:$4 sm:$0xff]   ;;  %v2137_v49 = vld [vmem:[#allocation9 + $0x60] ss:$16 sps:$4 sm:$0xff]   ;;  %v2139_v50 = vld [vmem:[#allocation9 + $0x68] ss:$16 sps:$4 sm:$0xff]  }
  0x48   :  { %v2143_v51 = vld [vmem:[#allocation9 + $0x84] ss:$16 sps:$4 sm:$0xff]   ;;  %v2147_v52 = vld [vmem:[#allocation9 + $0x8c] ss:$16 sps:$4 sm:$0xff]   ;;  %v2153_v54 = vld [vmem:[#allocation9 + $0x80] ss:$16 sps:$4 sm:$0xff]  }
  0x49   :  { %v1738_v53 = vld [vmem:[#allocation4 + $0x10] sm:$0xff]   ;;  %v2155_v55 = vld [vmem:[#allocation9 + $0x88] ss:$16 sps:$4 sm:$0xff]   ;;  %v2161_v57 = vld [vmem:[#allocation9 + $0xac] ss:$16 sps:$4 sm:$0xff]   ;;  %v109_v8 = vshrl.u32 %v108_v7, 7 }
  0x4a   :  { %321 = vmatpush1.bf16.msra.mxu0 %v1692_v19  ;;  %394 = vmatpush1.bf16.msra.mxu1 %v1693_v20  ;;  %v2159_v56 = vld [vmem:[#allocation9 + $0xa4] ss:$16 sps:$4 sm:$0xff]   ;;  %v2165_v58 = vld [vmem:[#allocation9 + $0xa0] ss:$16 sps:$4 sm:$0xff]   ;;  %v2167_v59 = vld [vmem:[#allocation9 + $0xa8] ss:$16 sps:$4 sm:$0xff]  }
  0x4b   :  { %322 = vmatprep.subr.bf16.mxu0 %v1694_v21  ;;  %395 = vmatprep.subr.bf16.mxu1 %v1696_v22  ;;  %v2171_v60 = vld [vmem:[#allocation9 + $0xc4] ss:$16 sps:$4 sm:$0xff]   ;;  %v2173_v61 = vld [vmem:[#allocation9 + $0xcc] ss:$16 sps:$4 sm:$0xff]   ;;  %v2179_v63 = vld [vmem:[#allocation9 + $0xc0] ss:$16 sps:$4 sm:$0xff]  }
  0x4c   :  { %v1751_v62 = vld [vmem:[#allocation4 + $0x18] sm:$0xff]   ;;  %v2185_v2 = vld [vmem:[#allocation9 + $0xe4] ss:$16 sps:$4 sm:$0xff]   ;;  %v2191_v4 = vld [vmem:[#allocation9 + $0xe0] ss:$16 sps:$4 sm:$0xff]   ;;  %v118_v9 = vsub.s32 2, %v109_v8 }
  0x4d   :  { %v2181_v1 = vld [vmem:[#allocation9 + $0xc8] ss:$16 sps:$4 sm:$0xff]   ;;  %v2187_v3 = vld [vmem:[#allocation9 + $0xec] ss:$16 sps:$4 sm:$0xff]   ;;  %v122_v10 = vsub.s32 3, %v109_v8  ;;  %v110_v11 = vsub.s32 0, %v109_v8 }
  0x4e   :  { %323 = vmatpush1.bf16.msra.mxu0 %v1698_v23  ;;  %396 = vmatpush1.bf16.msra.mxu1 %v1699_v24  ;;  %v2193_v5 = vld [vmem:[#allocation9 + $0xe8] ss:$16 sps:$4 sm:$0xff]   ;;  %v106_v12 = vld [vmem:[%s2619_s3] sm:$0xf]  ;;  %v114_v13 = vsub.s32 1, %v109_v8  ;;  %s2027_s3 = smov [#allocation10]  }
  0x4f   :  { %324 = vmatprep.subr.bf16.mxu0 %v1700_v25  ;;  %397 = vmatprep.subr.bf16.mxu1 %v1702_v26  ;;  %v2240_v14 = vrot.slane %v106_v12, %v118_v9  ;;  %v2246_v17 = vrot.slane %v106_v12, %v122_v10  ;;  %v111_v18 = vrot.slane %v106_v12, %v110_v11  ;;  %s1552_s26 = sshll.u32 %s2027_s3, 4  ;;  %s1553_s26 = int_to_ptr.vmem [resolvable:$true] %s1552_s26 }
  0x50   :  { %v115_v21 = vrot.slane %v106_v12, %v114_v13  ;;  %s1990_s29 = scalar_lea.vmem %s1553_s26, 128  ;;  %p1995_p11 = scmp.lt.s32.totalorder %s1553_s26, %s1553_s26 }
  0x51   :  { %p1991_p10 = scmp.ne.s32.totalorder %s1553_s26, %s1990_s29  ;;  %p1996_p12 = scmp.lt.s32.totalorder %s1990_s29, %s1990_s29 }
  0x52   :  { %325 = vmatpush1.bf16.msra.mxu0 %v1704_v27  ;;  %398 = vmatpush1.bf16.msra.mxu1 %v1705_v28 }
  0x53   :  { %326 = vmatprep.subr.bf16.mxu0 %v1706_v29  ;;  %399 = vmatprep.subr.bf16.mxu1 %v1708_v30  ;;  %p1997_p13 = por %p1996_p12, %p1995_p11 }
  0x55   :  { %p1998_p0 = pnand %p1997_p13, %p1991_p10 }
  0x56   :  { %327 = vmatpush1.bf16.msra.mxu0 %v1710_v31  ;;  %400 = vmatpush1.bf16.msra.mxu1 %v1711_v32 }
  0x57   :  { %653 = vmatprep.subr.bf16.mxu0 %v2097_v33  ;;  %694 = vmatprep.subr.bf16.mxu1 %v2099_v34 }
  0x59   :  { %345 = vmatmul.mubr.bf16.vlgmr.msra.gmra.mrb[0].mxu0 %v1712_v35  ;;  %418 = vmatmul.mubr.bf16.vlgmr.msra.gmra.mrb[0].mxu1 %v1712_v35 }
  0x5a   :  { %654 = vmatpush1.bf16.msra.mxu0 %v2101_v36  ;;  %695 = vmatpush1.bf16.msra.mxu1 %v2103_v37 }
  0x5b   :  { %655 = vmatprep.subr.bf16.mxu0 %v2107_v38  ;;  %696 = vmatprep.subr.bf16.mxu1 %v2109_v39 }
  0x5c   :  { %354 = vmatprep.mubr.bf16.mxu0 %v2621_v0  ;;  %427 = vmatprep.mubr.bf16.mxu1 %v2621_v0 }
  0x5e   :  { %656 = vmatpush1.bf16.msra.mxu0 %v2111_v40  ;;  %697 = vmatpush1.bf16.msra.mxu1 %v2115_v41 }
  0x5f   :  { %657 = vmatprep.subr.bf16.mxu0 %v2119_v42  ;;  %698 = vmatprep.subr.bf16.mxu1 %v2121_v43 }
  0x61   :  { %355 = vmatmul.mubr.bf16.gmra.mrb[4].mxu0 %v1725_v44  ;;  %428 = vmatmul.mubr.bf16.gmra.mrb[4].mxu1 %v1725_v44 }
  0x62   :  { %658 = vmatpush1.bf16.msra.mxu0 %v2125_v45  ;;  %699 = vmatpush1.bf16.msra.mxu1 %v2127_v46 }
  0x63   :  { %659 = vmatprep.subr.bf16.mxu0 %v2131_v47  ;;  %700 = vmatprep.subr.bf16.mxu1 %v2135_v48 }
  0x64   :  { %364 = vmatprep.mubr.bf16.mxu0 %v2621_v0  ;;  %437 = vmatprep.mubr.bf16.mxu1 %v2621_v0 }
  0x66   :  { %660 = vmatpush1.bf16.msra.mxu0 %v2137_v49  ;;  %701 = vmatpush1.bf16.msra.mxu1 %v2139_v50 }
  0x67   :  { %661 = vmatprep.subr.bf16.mxu0 %v2143_v51  ;;  %702 = vmatprep.subr.bf16.mxu1 %v2147_v52 }
  0x69   :  { %365 = vmatmul.mubr.bf16.gmra.mrb[8].mxu0 %v1738_v53  ;;  %438 = vmatmul.mubr.bf16.gmra.mrb[8].mxu1 %v1738_v53 }
  0x6a   :  { %662 = vmatpush1.bf16.msra.mxu0 %v2153_v54  ;;  %703 = vmatpush1.bf16.msra.mxu1 %v2155_v55 }
  0x6b   :  { %663 = vmatprep.subr.bf16.mxu0 %v2159_v56  ;;  %704 = vmatprep.subr.bf16.mxu1 %v2161_v57 }
  0x6c   :  { %374 = vmatprep.mubr.bf16.mxu0 %v2621_v0  ;;  %447 = vmatprep.mubr.bf16.mxu1 %v2621_v0 }
  0x6e   :  { %664 = vmatpush1.bf16.msra.mxu0 %v2165_v58  ;;  %705 = vmatpush1.bf16.msra.mxu1 %v2167_v59 }
  0x6f   :  { %665 = vmatprep.subr.bf16.mxu0 %v2171_v60  ;;  %706 = vmatprep.subr.bf16.mxu1 %v2173_v61 }
  0x71   :  { %375 = vmatmul.mubr.bf16.gmra.mrb[12].mxu0 %v1751_v62  ;;  %448 = vmatmul.mubr.bf16.gmra.mrb[12].mxu1 %v1751_v62 }
  0x72   :  { %666 = vmatpush1.bf16.msra.mxu0 %v2179_v63  ;;  %707 = vmatpush1.bf16.msra.mxu1 %v2181_v1 }
  0x73   :  { %667 = vmatprep.subr.bf16.mxu0 %v2185_v2  ;;  %708 = vmatprep.subr.bf16.mxu1 %v2187_v3 }
  0x74   :  { %685 = vmatprep.mubr.bf16.mxu0 %v2621_v0  ;;  %726 = vmatprep.mubr.bf16.mxu1 %v2621_v0 }
  0x76   :  { %668 = vmatpush1.bf16.msra.mxu0 %v2191_v4  ;;  %709 = vmatpush1.bf16.msra.mxu1 %v2193_v5 }
  0x77   :  { %764 = vmatprep.subr.bf16.mxu0 %v2097_v33  ;;  %805 = vmatprep.subr.bf16.mxu1 %v2099_v34 }
  0x79   :  { %686 = vmatmul.mubr.bf16.vlgmr.msra.gmra.mrb[16].mxu0 %v2026_v6  ;;  %727 = vmatmul.mubr.bf16.vlgmr.msra.gmra.mrb[16].mxu1 %v2026_v6 }
  0x7a   :  { %765 = vmatpush1.bf16.msra.mxu0 %v2101_v36  ;;  %806 = vmatpush1.bf16.msra.mxu1 %v2103_v37 }
  0x7b   :  { %766 = vmatprep.subr.bf16.mxu0 %v2107_v38  ;;  %807 = vmatprep.subr.bf16.mxu1 %v2109_v39 }
  0x7c   :  { %796 = vmatprep.mubr.bf16.mxu0 %v2621_v0  ;;  %837 = vmatprep.mubr.bf16.mxu1 %v2621_v0 }
  0x7e   :  { %767 = vmatpush1.bf16.msra.mxu0 %v2111_v40  ;;  %808 = vmatpush1.bf16.msra.mxu1 %v2115_v41 }
  0x7f   :  { %768 = vmatprep.subr.bf16.mxu0 %v2119_v42  ;;  %809 = vmatprep.subr.bf16.mxu1 %v2121_v43 }
  0x82   :  { %769 = vmatpush1.bf16.msra.mxu0 %v2125_v45  ;;  %810 = vmatpush1.bf16.msra.mxu1 %v2127_v46 }
  0x83   :  { %770 = vmatprep.subr.bf16.mxu0 %v2131_v47  ;;  %811 = vmatprep.subr.bf16.mxu1 %v2135_v48 }
  0x86   :  { %771 = vmatpush1.bf16.msra.mxu0 %v2137_v49  ;;  %812 = vmatpush1.bf16.msra.mxu1 %v2139_v50 }
  0x87   :  { %772 = vmatprep.subr.bf16.mxu0 %v2143_v51  ;;  %813 = vmatprep.subr.bf16.mxu1 %v2147_v52 }
  0x8a   :  { %773 = vmatpush1.bf16.msra.mxu0 %v2153_v54  ;;  %814 = vmatpush1.bf16.msra.mxu1 %v2155_v55 }
  0x8b   :  { %774 = vmatprep.subr.bf16.mxu0 %v2159_v56  ;;  %815 = vmatprep.subr.bf16.mxu1 %v2161_v57 }
  0x8e   :  { %775 = vmatpush1.bf16.msra.mxu0 %v2165_v58  ;;  %816 = vmatpush1.bf16.msra.mxu1 %v2167_v59 }
  0x8f   :  { %776 = vmatprep.subr.bf16.mxu0 %v2171_v60  ;;  %817 = vmatprep.subr.bf16.mxu1 %v2173_v61 }
  0x92   :  { %777 = vmatpush1.bf16.msra.mxu0 %v2179_v63  ;;  %818 = vmatpush1.bf16.msra.mxu1 %v2181_v1 }
  0x93   :  { %778 = vmatprep.subr.bf16.mxu0 %v2185_v2  ;;  %819 = vmatprep.subr.bf16.mxu1 %v2187_v3 }
  0x96   :  { %779 = vmatpush1.bf16.msra.mxu0 %v2191_v4  ;;  %820 = vmatpush1.bf16.msra.mxu1 %v2193_v5 }
  0x97   :  { %875 = vmatprep.subr.bf16.mxu0 %v2097_v33  ;;  %916 = vmatprep.subr.bf16.mxu1 %v2099_v34 }
 0x12c   :  { %v2242_v15 = vpop.f32.mrb[0].mxu0  ;;  %v2244_v16 = vpop.f32.mrb[0].mxu1 }
 0x12d   :  { %v348_v19 = vpop.f32.mrb[1].mxu0  ;;  %v421_v20 = vpop.f32.mrb[1].mxu1 }
 0x12e   :  { %v350_v22 = vpop.f32.mrb[2].mxu0  ;;  %v423_v23 = vpop.f32.mrb[2].mxu1 }
 0x12f   :  { %v2248_v24 = vadd.f32 %v350_v22, %v111_v18  ;;  %v352_v25 = vpop.f32.mrb[3].mxu0  ;;  %v2251_v26 = vadd.f32 %v423_v23, %v2240_v14  ;;  %v425_v27 = vpop.f32.mrb[3].mxu1 }
 0x130   :  { %v2253_v28 = vadd.f32 %v352_v25, %v115_v21  ;;  %v2256_v29 = vadd.f32 %v425_v27, %v2246_v17 }
 0x134   :  { %v356_v30 = vpop.f32.mrb[4].mxu0  ;;  %v429_v31 = vpop.f32.mrb[4].mxu1 }
 0x135   :  { %v2258_v32 = vadd.f32 %v356_v30, %v111_v18  ;;  %v358_v35 = vpop.f32.mrb[5].mxu0  ;;  %v2261_v44 = vadd.f32 %v429_v31, %v2240_v14  ;;  %v431_v53 = vpop.f32.mrb[5].mxu1 }
 0x136   :  { %v2263_v62 = vadd.f32 %v358_v35, %v115_v21  ;;  %v360_v6 = vpop.f32.mrb[6].mxu0  ;;  %v2266_v7 = vadd.f32 %v431_v53, %v2246_v17  ;;  %v433_v8 = vpop.f32.mrb[6].mxu1 }
 0x137   :  { %v2268_v9 = vadd.f32 %v360_v6, %v111_v18  ;;  %v362_v10 = vpop.f32.mrb[7].mxu0  ;;  %v2271_v11 = vadd.f32 %v433_v8, %v2240_v14  ;;  %v435_v12 = vpop.f32.mrb[7].mxu1 }
 0x138   :  { %2623 = vst [vmem:[#allocation14_spill] sm:$0xff] %v2266_v7  ;;  %v2273_v13 = vadd.f32 %v362_v10, %v115_v21  ;;  %v2276_v22 = vadd.f32 %v435_v12, %v2246_v17 }
 0x139   :  { %2624 = vst [vmem:[#allocation15_spill] sm:$0xff] %v2268_v9  ;;  %2625 = vst [vmem:[#allocation16_spill] sm:$0xff] %v2271_v11 }
 0x13a   :  { %2626 = vst [vmem:[#allocation17_spill] sm:$0xff] %v2273_v13  ;;  %2627 = vst [vmem:[#allocation18_spill] sm:$0xff] %v2276_v22 }
 0x13c   :  { %v366_v23 = vpop.f32.mrb[8].mxu0  ;;  %v439_v25 = vpop.f32.mrb[8].mxu1 }
 0x13d   :  { %v2278_v27 = vadd.f32 %v366_v23, %v111_v18  ;;  %v368_v30 = vpop.f32.mrb[9].mxu0  ;;  %v2281_v31 = vadd.f32 %v439_v25, %v2240_v14  ;;  %v441_v35 = vpop.f32.mrb[9].mxu1 }
 0x13e   :  { %v2283_v53 = vadd.f32 %v368_v30, %v115_v21  ;;  %v370_v6 = vpop.f32.mrb[10].mxu0  ;;  %v2286_v8 = vadd.f32 %v441_v35, %v2246_v17  ;;  %v443_v10 = vpop.f32.mrb[10].mxu1 }
 0x13f   :  { %2628 = vst [vmem:[#allocation19_spill] sm:$0xff] %v2278_v27  ;;  %2629 = vst [vmem:[#allocation20_spill] sm:$0xff] %v2281_v31  ;;  %v2288_v0 = vadd.f32 %v370_v6, %v111_v18  ;;  %v372_v12 = vpop.f32.mrb[11].mxu0  ;;  %v2291_v22 = vadd.f32 %v443_v10, %v2240_v14  ;;  %v445_v23 = vpop.f32.mrb[11].mxu1 }
 0x140   :  { %2630 = vst [vmem:[#allocation21_spill] sm:$0xff] %v2283_v53  ;;  %2631 = vst [vmem:[#allocation22_spill] sm:$0xff] %v2286_v8  ;;  %v2293_v27 = vadd.f32 %v372_v12, %v115_v21  ;;  %v2296_v25 = vadd.f32 %v445_v23, %v2246_v17 }
 0x141   :  { %2632 = vst [vmem:[#allocation23_spill] sm:$0xff] %v2288_v0  ;;  %2633 = vst [vmem:[#allocation24_spill] sm:$0xff] %v2291_v22 }
 0x142   :  { %2634 = vst [vmem:[#allocation25_spill] sm:$0xff] %v2293_v27  ;;  %2635 = vst [vmem:[#allocation26_spill] sm:$0xff] %v2296_v25 }
 0x144   :  { %v376_v31 = vpop.f32.mrb[12].mxu0  ;;  %v449_v30 = vpop.f32.mrb[12].mxu1 }
 0x145   :  { %v2298_v53 = vadd.f32 %v376_v31, %v111_v18  ;;  %v378_v13 = vpop.f32.mrb[13].mxu0  ;;  %v2301_v35 = vadd.f32 %v449_v30, %v2240_v14  ;;  %v451_v6 = vpop.f32.mrb[13].mxu1 }
 0x146   :  { %v2303_v0 = vadd.f32 %v378_v13, %v115_v21  ;;  %v380_v8 = vpop.f32.mrb[14].mxu0  ;;  %v2306_v10 = vadd.f32 %v451_v6, %v2246_v17  ;;  %v453_v12 = vpop.f32.mrb[14].mxu1  ;;  %v347_v13 = vadd.f32 %v2242_v15, %v111_v18  ;;  %v349_v6 = vadd.f32 %v348_v19, %v115_v21 }
 0x147   :  { %2636 = vst [vmem:[#allocation27_spill] sm:$0xff] %v2298_v53  ;;  %2637 = vst [vmem:[#allocation28_spill] sm:$0xff] %v2301_v35  ;;  %v2308_v27 = vadd.f32 %v380_v8, %v111_v18  ;;  %v382_v23 = vpop.f32.mrb[15].mxu0  ;;  %v2311_v25 = vadd.f32 %v453_v12, %v2240_v14  ;;  %v455_v31 = vpop.f32.mrb[15].mxu1 }
 0x148   :  { %2638 = vst [vmem:[#allocation29_spill] sm:$0xff] %v2303_v0  ;;  %2639 = vst [vmem:[#allocation30_spill] sm:$0xff] %v2306_v10  ;;  %v2313_v53 = vadd.f32 %v382_v23, %v115_v21  ;;  %v2316_v30 = vadd.f32 %v455_v31, %v2246_v17  ;;  %v420_v0 = vadd.f32 %v2244_v16, %v2240_v14 }
 0x149   :  { %2640 = vst [vmem:[#allocation31_spill] sm:$0xff] %v2308_v27  ;;  %2641 = vst [vmem:[#allocation32_spill] sm:$0xff] %v2311_v25  ;;  %v422_v10 = vadd.f32 %v421_v20, %v2246_v17 }
 0x14a   :  { %2642 = vst [vmem:[#allocation33_spill] sm:$0xff] %v2313_v53  ;;  %2643 = vst [vmem:[#allocation34_spill] sm:$0xff] %v2316_v30 }
 0x14c   :  { %v687_v8 = vpop.f32.mrb[16].mxu0  ;;  %v728_v27 = vpop.f32.mrb[16].mxu1 }
 0x14d   :  { %v735_v35 = vadd.f32 %v687_v8, %v347_v13  ;;  %v737_v22 = vadd.f32 %v728_v27, %v420_v0  ;;  %v689_v12 = vpop.f32.mrb[17].mxu0  ;;  %v730_v25 = vpop.f32.mrb[17].mxu1 }
 0x14e   :  { %v736_v11 = vadd.f32 %v689_v12, %v349_v6  ;;  %v738_v23 = vadd.f32 %v730_v25, %v422_v10  ;;  %v691_v53 = vpop.f32.mrb[18].mxu0  ;;  %v732_v9 = vpop.f32.mrb[18].mxu1 }
 0x14f   :  { %v1630_v31 = vmul.f32 -1.442695, %v735_v35  ;;  %v692_v30 = vpop.f32.mrb[19].mxu0  ;;  %v733_v7 = vpop.f32.mrb[19].mxu1 }
 0x150   :  { %v1631_v15 = vmul.f32 -1.442695, %v736_v11  ;;  %v1632_v14 = vmul.f32 -1.442695, %v738_v23 }
 0x151   :  { %1764 = vpow2.f32 %v1630_v31 }
 0x152   :  { %1766 = vpow2.f32 %v1631_v15 }
 0x153   :  { %1768 = vpow2.f32 %v1632_v14 }
 0x154   :  { %1770 = vtanh.f32 %v737_v22  ;;  %v2644_v22 = vmov 0  }
 0x15b   :  { %v1765_v16 = vpop.eup %1764 }
 0x15c   :  { %v1767_v18 = vpop.eup %1766  ;;  %v742_v17 = vadd.f32 1.0, %v1765_v16 }
 0x15d   :  { %v748_v19 = vadd.f32 1.0, %v1767_v18  ;;  %v1769_v0 = vpop.eup %1768 }
 0x15e   :  { %1772 = vrcp.f32 %v742_v17  ;;  %v1771_v20 = vpop.eup %1770  ;;  %v755_v53 = vadd.f32 1.0, %v1769_v0 }
 0x15f   :  { %1774 = vrcp.f32 %v748_v19 }
 0x160   :  { %1776 = vrcp.f32 %v755_v53 }
 0x168   :  { %v1773_v21 = vpop.eup %1772 }
 0x169   :  { %v1775_v27 = vpop.eup %1774  ;;  %v759_v9 = vmul.f32 %v1773_v21, %v1771_v20 }
 0x16a   :  { %v758_v25 = vmul.f32 0.0, %v1775_v27  ;;  %v1777_v11 = vpop.eup %1776 }
 0x16c   :  { %v2322_v7 = vadd.f32 %v759_v9, %v758_v25 }
 0x16e   :  { %1778 = vtanh.f32 %v2322_v7 }
 0x178   :  { %v1779_v35 = vpop.eup %1778 }
 0x179   :  { %v762_v10 = vmul.f32 %v1779_v35, %v1777_v11 }
 0x17b   :  { %v763_v30 = vpack.c.bf16 %v762_v10, %v762_v10 }
 0x17d   :  { %797 = vmatmul.mubr.bf16.vlgmr.msra.gmra.mrb[20].mxu0 %v763_v30  ;;  %838 = vmatmul.mubr.bf16.vlgmr.msra.gmra.mrb[20].mxu1 %v763_v30 }
 0x17e   :  { %876 = vmatpush1.bf16.msra.mxu0 %v2101_v36  ;;  %917 = vmatpush1.bf16.msra.mxu1 %v2103_v37 }
 0x17f   :  { %877 = vmatprep.subr.bf16.mxu0 %v2107_v38  ;;  %918 = vmatprep.subr.bf16.mxu1 %v2109_v39 }
 0x180   :  { %907 = vmatprep.mubr.bf16.mxu0 %v2644_v22  ;;  %948 = vmatprep.mubr.bf16.mxu1 %v2644_v22 }
 0x182   :  { %878 = vmatpush1.bf16.msra.mxu0 %v2111_v40  ;;  %919 = vmatpush1.bf16.msra.mxu1 %v2115_v41 }
 0x183   :  { %879 = vmatprep.subr.bf16.mxu0 %v2119_v42  ;;  %920 = vmatprep.subr.bf16.mxu1 %v2121_v43 }
 0x186   :  { %880 = vmatpush1.bf16.msra.mxu0 %v2125_v45  ;;  %921 = vmatpush1.bf16.msra.mxu1 %v2127_v46 }
 0x187   :  { %881 = vmatprep.subr.bf16.mxu0 %v2131_v47  ;;  %922 = vmatprep.subr.bf16.mxu1 %v2135_v48 }
 0x18a   :  { %882 = vmatpush1.bf16.msra.mxu0 %v2137_v49  ;;  %923 = vmatpush1.bf16.msra.mxu1 %v2139_v50 }
 0x18b   :  { %883 = vmatprep.subr.bf16.mxu0 %v2143_v51  ;;  %924 = vmatprep.subr.bf16.mxu1 %v2147_v52 }
 0x18e   :  { %884 = vmatpush1.bf16.msra.mxu0 %v2153_v54  ;;  %925 = vmatpush1.bf16.msra.mxu1 %v2155_v55 }
 0x18f   :  { %885 = vmatprep.subr.bf16.mxu0 %v2159_v56  ;;  %926 = vmatprep.subr.bf16.mxu1 %v2161_v57 }
 0x192   :  { %886 = vmatpush1.bf16.msra.mxu0 %v2165_v58  ;;  %927 = vmatpush1.bf16.msra.mxu1 %v2167_v59 }
 0x193   :  { %887 = vmatprep.subr.bf16.mxu0 %v2171_v60  ;;  %928 = vmatprep.subr.bf16.mxu1 %v2173_v61 }
 0x196   :  { %888 = vmatpush1.bf16.msra.mxu0 %v2179_v63  ;;  %929 = vmatpush1.bf16.msra.mxu1 %v2181_v1 }
 0x197   :  { %889 = vmatprep.subr.bf16.mxu0 %v2185_v2  ;;  %930 = vmatprep.subr.bf16.mxu1 %v2187_v3 }
 0x19a   :  { %890 = vmatpush1.bf16.msra.mxu0 %v2191_v4  ;;  %931 = vmatpush1.bf16.msra.mxu1 %v2193_v5 }
 0x19b   :  { %986 = vmatprep.subr.bf16.mxu0 %v2097_v33  ;;  %1027 = vmatprep.subr.bf16.mxu1 %v2099_v34 }
 0x250   :  { %v798_v13 = vpop.f32.mrb[20].mxu0  ;;  %v839_v6 = vpop.f32.mrb[20].mxu1 }
 0x251   :  { %v846_v8 = vadd.f32 %v798_v13, %v2248_v24  ;;  %v848_v12 = vadd.f32 %v839_v6, %v2251_v26  ;;  %v800_v23 = vpop.f32.mrb[21].mxu0  ;;  %v841_v31 = vpop.f32.mrb[21].mxu1 }
 0x252   :  { %v847_v15 = vadd.f32 %v800_v23, %v2253_v28  ;;  %v849_v14 = vadd.f32 %v841_v31, %v2256_v29  ;;  %v802_v16 = vpop.f32.mrb[22].mxu0  ;;  %v843_v18 = vpop.f32.mrb[22].mxu1 }
 0x253   :  { %v1633_v17 = vmul.f32 -1.442695, %v846_v8  ;;  %v803_v19 = vpop.f32.mrb[23].mxu0  ;;  %v844_v0 = vpop.f32.mrb[23].mxu1 }
 0x254   :  { %v1634_v20 = vmul.f32 -1.442695, %v847_v15  ;;  %v1635_v21 = vmul.f32 -1.442695, %v849_v14 }
 0x255   :  { %1780 = vpow2.f32 %v1633_v17  ;;  %v2645_v17 = vld [vmem:[#allocation14_spill] sm:$0xff] }
 0x256   :  { %1782 = vpow2.f32 %v1634_v20 }
 0x257   :  { %1784 = vpow2.f32 %v1635_v21 }
 0x258   :  { %1786 = vtanh.f32 %v848_v12 }
 0x25f   :  { %v1781_v27 = vpop.eup %1780 }
 0x260   :  { %v1783_v9 = vpop.eup %1782  ;;  %v853_v24 = vadd.f32 1.0, %v1781_v27 }
 0x261   :  { %v859_v26 = vadd.f32 1.0, %v1783_v9  ;;  %v1785_v28 = vpop.eup %1784 }
 0x262   :  { %1788 = vrcp.f32 %v853_v24  ;;  %v1787_v53 = vpop.eup %1786  ;;  %v866_v35 = vadd.f32 1.0, %v1785_v28 }
 0x263   :  { %1790 = vrcp.f32 %v859_v26 }
 0x264   :  { %1792 = vrcp.f32 %v866_v35 }
 0x26c   :  { %v1789_v29 = vpop.eup %1788 }
 0x26d   :  { %v1791_v25 = vpop.eup %1790  ;;  %v870_v11 = vmul.f32 %v1789_v29, %v1787_v53 }
 0x26e   :  { %v869_v10 = vmul.f32 %v1791_v25, %v2322_v7  ;;  %v1793_v13 = vpop.eup %1792 }
 0x270   :  { %v2364_v30 = vadd.f32 %v870_v11, %v869_v10 }
 0x272   :  { %1794 = vtanh.f32 %v2364_v30 }
 0x27c   :  { %v1795_v6 = vpop.eup %1794 }
 0x27d   :  { %v873_v8 = vmul.f32 %v1795_v6, %v1793_v13 }
 0x27f   :  { %v874_v12 = vpack.c.bf16 %v873_v8, %v873_v8 }
 0x281   :  { %908 = vmatmul.mubr.bf16.vlgmr.msra.gmra.mrb[24].mxu0 %v874_v12  ;;  %949 = vmatmul.mubr.bf16.vlgmr.msra.gmra.mrb[24].mxu1 %v874_v12 }
 0x282   :  { %987 = vmatpush1.bf16.msra.mxu0 %v2101_v36  ;;  %1028 = vmatpush1.bf16.msra.mxu1 %v2103_v37 }
 0x283   :  { %988 = vmatprep.subr.bf16.mxu0 %v2107_v38  ;;  %1029 = vmatprep.subr.bf16.mxu1 %v2109_v39 }
 0x284   :  { %1018 = vmatprep.mubr.bf16.mxu0 %v2644_v22  ;;  %1059 = vmatprep.mubr.bf16.mxu1 %v2644_v22 }
 0x286   :  { %989 = vmatpush1.bf16.msra.mxu0 %v2111_v40  ;;  %1030 = vmatpush1.bf16.msra.mxu1 %v2115_v41 }
 0x287   :  { %990 = vmatprep.subr.bf16.mxu0 %v2119_v42  ;;  %1031 = vmatprep.subr.bf16.mxu1 %v2121_v43 }
 0x28a   :  { %991 = vmatpush1.bf16.msra.mxu0 %v2125_v45  ;;  %1032 = vmatpush1.bf16.msra.mxu1 %v2127_v46 }
 0x28b   :  { %992 = vmatprep.subr.bf16.mxu0 %v2131_v47  ;;  %1033 = vmatprep.subr.bf16.mxu1 %v2135_v48 }
 0x28e   :  { %993 = vmatpush1.bf16.msra.mxu0 %v2137_v49  ;;  %1034 = vmatpush1.bf16.msra.mxu1 %v2139_v50 }
 0x28f   :  { %994 = vmatprep.subr.bf16.mxu0 %v2143_v51  ;;  %1035 = vmatprep.subr.bf16.mxu1 %v2147_v52 }
 0x292   :  { %995 = vmatpush1.bf16.msra.mxu0 %v2153_v54  ;;  %1036 = vmatpush1.bf16.msra.mxu1 %v2155_v55 }
 0x293   :  { %996 = vmatprep.subr.bf16.mxu0 %v2159_v56  ;;  %1037 = vmatprep.subr.bf16.mxu1 %v2161_v57 }
 0x296   :  { %997 = vmatpush1.bf16.msra.mxu0 %v2165_v58  ;;  %1038 = vmatpush1.bf16.msra.mxu1 %v2167_v59 }
 0x297   :  { %998 = vmatprep.subr.bf16.mxu0 %v2171_v60  ;;  %1039 = vmatprep.subr.bf16.mxu1 %v2173_v61 }
 0x29a   :  { %999 = vmatpush1.bf16.msra.mxu0 %v2179_v63  ;;  %1040 = vmatpush1.bf16.msra.mxu1 %v2181_v1 }
 0x29b   :  { %1000 = vmatprep.subr.bf16.mxu0 %v2185_v2  ;;  %1041 = vmatprep.subr.bf16.mxu1 %v2187_v3 }
 0x29e   :  { %1001 = vmatpush1.bf16.msra.mxu0 %v2191_v4  ;;  %1042 = vmatpush1.bf16.msra.mxu1 %v2193_v5 }
 0x29f   :  { %1097 = vmatprep.subr.bf16.mxu0 %v2097_v33  ;;  %1138 = vmatprep.subr.bf16.mxu1 %v2099_v34 }
 0x354   :  { %v909_v7 = vpop.f32.mrb[24].mxu0  ;;  %v950_v23 = vpop.f32.mrb[24].mxu1 }
 0x355   :  { %v957_v31 = vadd.f32 %v909_v7, %v2258_v32  ;;  %v959_v15 = vadd.f32 %v950_v23, %v2261_v44  ;;  %v911_v14 = vpop.f32.mrb[25].mxu0  ;;  %v952_v16 = vpop.f32.mrb[25].mxu1 }
 0x356   :  { %v958_v18 = vadd.f32 %v911_v14, %v2263_v62  ;;  %v960_v19 = vadd.f32 %v952_v16, %v2645_v17  ;;  %v913_v0 = vpop.f32.mrb[26].mxu0  ;;  %v954_v20 = vpop.f32.mrb[26].mxu1  ;;  %v2647_v16 = vld [vmem:[#allocation16_spill] sm:$0xff] }
 0x357   :  { %v1636_v21 = vmul.f32 -1.442695, %v957_v31  ;;  %v914_v27 = vpop.f32.mrb[27].mxu0  ;;  %v955_v9 = vpop.f32.mrb[27].mxu1  ;;  %v2648_v0 = vld [vmem:[#allocation17_spill] sm:$0xff] }
 0x358   :  { %v1637_v24 = vmul.f32 -1.442695, %v958_v18  ;;  %v1638_v26 = vmul.f32 -1.442695, %v960_v19 }
 0x359   :  { %1796 = vpow2.f32 %v1636_v21  ;;  %v2649_v21 = vld [vmem:[#allocation18_spill] sm:$0xff] }
 0x35a   :  { %1798 = vpow2.f32 %v1637_v24 }
 0x35b   :  { %1800 = vpow2.f32 %v1638_v26 }
 0x35c   :  { %1802 = vtanh.f32 %v959_v15  ;;  %v2646_v15 = vld [vmem:[#allocation15_spill] sm:$0xff] }
 0x363   :  { %v1797_v28 = vpop.eup %1796 }
 0x364   :  { %v1799_v53 = vpop.eup %1798  ;;  %v964_v32 = vadd.f32 1.0, %v1797_v28 }
 0x365   :  { %v970_v44 = vadd.f32 1.0, %v1799_v53  ;;  %v1801_v62 = vpop.eup %1800 }
 0x366   :  { %1804 = vrcp.f32 %v964_v32  ;;  %v1803_v29 = vpop.eup %1802  ;;  %v977_v10 = vadd.f32 1.0, %v1801_v62 }
 0x367   :  { %1806 = vrcp.f32 %v970_v44 }
 0x368   :  { %1808 = vrcp.f32 %v977_v10 }
 0x370   :  { %v1805_v25 = vpop.eup %1804 }
 0x371   :  { %v1807_v11 = vpop.eup %1806  ;;  %v981_v35 = vmul.f32 %v1805_v25, %v1803_v29 }
 0x372   :  { %v980_v13 = vmul.f32 %v1807_v11, %v2364_v30  ;;  %v1809_v8 = vpop.eup %1808 }
 0x374   :  { %v2406_v6 = vadd.f32 %v981_v35, %v980_v13 }
 0x376   :  { %1810 = vtanh.f32 %v2406_v6 }
 0x380   :  { %v1811_v12 = vpop.eup %1810 }
 0x381   :  { %v984_v7 = vmul.f32 %v1811_v12, %v1809_v8 }
 0x383   :  { %v985_v23 = vpack.c.bf16 %v984_v7, %v984_v7 }
 0x385   :  { %1019 = vmatmul.mubr.bf16.vlgmr.msra.gmra.mrb[28].mxu0 %v985_v23  ;;  %1060 = vmatmul.mubr.bf16.vlgmr.msra.gmra.mrb[28].mxu1 %v985_v23 }
 0x386   :  { %1098 = vmatpush1.bf16.msra.mxu0 %v2101_v36  ;;  %1139 = vmatpush1.bf16.msra.mxu1 %v2103_v37 }
 0x387   :  { %1099 = vmatprep.subr.bf16.mxu0 %v2107_v38  ;;  %1140 = vmatprep.subr.bf16.mxu1 %v2109_v39 }
 0x388   :  { %1129 = vmatprep.mubr.bf16.mxu0 %v2644_v22  ;;  %1170 = vmatprep.mubr.bf16.mxu1 %v2644_v22 }
 0x38a   :  { %1100 = vmatpush1.bf16.msra.mxu0 %v2111_v40  ;;  %1141 = vmatpush1.bf16.msra.mxu1 %v2115_v41 }
 0x38b   :  { %1101 = vmatprep.subr.bf16.mxu0 %v2119_v42  ;;  %1142 = vmatprep.subr.bf16.mxu1 %v2121_v43 }
 0x38e   :  { %1102 = vmatpush1.bf16.msra.mxu0 %v2125_v45  ;;  %1143 = vmatpush1.bf16.msra.mxu1 %v2127_v46 }
 0x38f   :  { %1103 = vmatprep.subr.bf16.mxu0 %v2131_v47  ;;  %1144 = vmatprep.subr.bf16.mxu1 %v2135_v48 }
 0x392   :  { %1104 = vmatpush1.bf16.msra.mxu0 %v2137_v49  ;;  %1145 = vmatpush1.bf16.msra.mxu1 %v2139_v50 }
 0x393   :  { %1105 = vmatprep.subr.bf16.mxu0 %v2143_v51  ;;  %1146 = vmatprep.subr.bf16.mxu1 %v2147_v52 }
 0x396   :  { %1106 = vmatpush1.bf16.msra.mxu0 %v2153_v54  ;;  %1147 = vmatpush1.bf16.msra.mxu1 %v2155_v55 }
 0x397   :  { %1107 = vmatprep.subr.bf16.mxu0 %v2159_v56  ;;  %1148 = vmatprep.subr.bf16.mxu1 %v2161_v57 }
 0x39a   :  { %1108 = vmatpush1.bf16.msra.mxu0 %v2165_v58  ;;  %1149 = vmatpush1.bf16.msra.mxu1 %v2167_v59 }
 0x39b   :  { %1109 = vmatprep.subr.bf16.mxu0 %v2171_v60  ;;  %1150 = vmatprep.subr.bf16.mxu1 %v2173_v61 }
 0x39e   :  { %1110 = vmatpush1.bf16.msra.mxu0 %v2179_v63  ;;  %1151 = vmatpush1.bf16.msra.mxu1 %v2181_v1 }
 0x39f   :  { %1111 = vmatprep.subr.bf16.mxu0 %v2185_v2  ;;  %1152 = vmatprep.subr.bf16.mxu1 %v2187_v3 }
 0x3a2   :  { %1112 = vmatpush1.bf16.msra.mxu0 %v2191_v4  ;;  %1153 = vmatpush1.bf16.msra.mxu1 %v2193_v5 }
 0x3a3   :  { %1208 = vmatprep.subr.bf16.mxu0 %v2097_v33  ;;  %1249 = vmatprep.subr.bf16.mxu1 %v2099_v34 }
 0x458   :  { %v1020_v30 = vpop.f32.mrb[28].mxu0  ;;  %v1061_v31 = vpop.f32.mrb[28].mxu1 }
 0x459   :  { %v1068_v14 = vadd.f32 %v1020_v30, %v2646_v15  ;;  %v1070_v18 = vadd.f32 %v1061_v31, %v2647_v16  ;;  %v1022_v17 = vpop.f32.mrb[29].mxu0  ;;  %v1063_v19 = vpop.f32.mrb[29].mxu1 }
 0x45a   :  { %v1069_v20 = vadd.f32 %v1022_v17, %v2648_v0  ;;  %v1071_v27 = vadd.f32 %v1063_v19, %v2649_v21  ;;  %v1024_v9 = vpop.f32.mrb[30].mxu0  ;;  %v1065_v24 = vpop.f32.mrb[30].mxu1 }
 0x45b   :  { %v1639_v26 = vmul.f32 -1.442695, %v1068_v14  ;;  %v1025_v28 = vpop.f32.mrb[31].mxu0  ;;  %v1066_v53 = vpop.f32.mrb[31].mxu1 }
 0x45c   :  { %v1640_v33 = vmul.f32 -1.442695, %v1069_v20  ;;  %v1641_v34 = vmul.f32 -1.442695, %v1071_v27 }
 0x45d   :  { %1812 = vpow2.f32 %v1639_v26 }
 0x45e   :  { %1814 = vpow2.f32 %v1640_v33 }
 0x45f   :  { %1816 = vpow2.f32 %v1641_v34 }
 0x460   :  { %1818 = vtanh.f32 %v1070_v18 }
 0x467   :  { %v1813_v32 = vpop.eup %1812 }
 0x468   :  { %v1815_v44 = vpop.eup %1814  ;;  %v1075_v62 = vadd.f32 1.0, %v1813_v32 }
 0x469   :  { %v1081_v29 = vadd.f32 1.0, %v1815_v44  ;;  %v1817_v25 = vpop.eup %1816 }
 0x46a   :  { %1820 = vrcp.f32 %v1075_v62  ;;  %v1819_v11 = vpop.eup %1818  ;;  %v1088_v8 = vadd.f32 1.0, %v1817_v25  ;;  %v2497_v62 = vld [vmem:[#allocation9] ss:$16 sps:$4 sm:$0xff]   ;;  %v2503_v25 = vld [vmem:[#allocation9 + $0x24] ss:$16 sps:$4 sm:$0xff]  }
 0x46b   :  { %1822 = vrcp.f32 %v1081_v29  ;;  %v2500_v29 = vld [vmem:[#allocation9 + $0x8] ss:$16 sps:$4 sm:$0xff]  }
 0x46c   :  { %1824 = vrcp.f32 %v1088_v8  ;;  %v2520_v8 = vld [vmem:[#allocation9 + $0x4c] ss:$16 sps:$4 sm:$0xff]  }
 0x474   :  { %v1821_v35 = vpop.eup %1820 }
 0x475   :  { %v1823_v10 = vpop.eup %1822  ;;  %v1092_v13 = vmul.f32 %v1821_v35, %v1819_v11  ;;  %v2506_v11 = vld [vmem:[#allocation9 + $0x2c] ss:$16 sps:$4 sm:$0xff]   ;;  %v2511_v35 = vld [vmem:[#allocation9 + $0x20] ss:$16 sps:$4 sm:$0xff]  }
 0x476   :  { %v1091_v12 = vmul.f32 %v1823_v10, %v2406_v6  ;;  %v1825_v23 = vpop.eup %1824  ;;  %v2514_v10 = vld [vmem:[#allocation9 + $0x28] ss:$16 sps:$4 sm:$0xff]  }
 0x478   :  { %v2448_v7 = vadd.f32 %v1092_v13, %v1091_v12  ;;  %v2517_v13 = vld [vmem:[#allocation9 + $0x44] ss:$16 sps:$4 sm:$0xff]   ;;  %v2523_v12 = vld [vmem:[#allocation9 + $0x40] ss:$16 sps:$4 sm:$0xff]  }
 0x47a   :  { %1826 = vtanh.f32 %v2448_v7 }
 0x484   :  { %v1827_v30 = vpop.eup %1826 }
 0x485   :  { %v1095_v31 = vmul.f32 %v1827_v30, %v1825_v23  ;;  %v2529_v23 = vld [vmem:[#allocation9 + $0x64] ss:$16 sps:$4 sm:$0xff]   ;;  %v2532_v30 = vld [vmem:[#allocation9 + $0x6c] ss:$16 sps:$4 sm:$0xff]  }
 0x487   :  { %v1096_v15 = vpack.c.bf16 %v1095_v31, %v1095_v31  ;;  %v2535_v31 = vld [vmem:[#allocation9 + $0x60] ss:$16 sps:$4 sm:$0xff]  }
 0x489   :  { %1130 = vmatmul.mubr.bf16.vlgmr.msra.gmra.mrb[32].mxu0 %v1096_v15  ;;  %1171 = vmatmul.mubr.bf16.vlgmr.msra.gmra.mrb[32].mxu1 %v1096_v15  ;;  %v2538_v15 = vld [vmem:[#allocation9 + $0x68] ss:$16 sps:$4 sm:$0xff]  }
 0x48a   :  { %1209 = vmatpush1.bf16.msra.mxu0 %v2101_v36  ;;  %1250 = vmatpush1.bf16.msra.mxu1 %v2103_v37  ;;  %v2483_v36 = vld [vmem:[#allocation9 + $0x4] ss:$16 sps:$4 sm:$0xff]   ;;  %v2486_v37 = vld [vmem:[#allocation9 + $0xc] ss:$16 sps:$4 sm:$0xff]  }
 0x48b   :  { %1210 = vmatprep.subr.bf16.mxu0 %v2107_v38  ;;  %1251 = vmatprep.subr.bf16.mxu1 %v2109_v39 }
 0x48c   :  { %1240 = vmatprep.mubr.bf16.mxu0 %v2644_v22  ;;  %1281 = vmatprep.mubr.bf16.mxu1 %v2644_v22 }
 0x48e   :  { %1211 = vmatpush1.bf16.msra.mxu0 %v2111_v40  ;;  %1252 = vmatpush1.bf16.msra.mxu1 %v2115_v41  ;;  %v2650_v40 = vld [vmem:[#allocation19_spill] sm:$0xff] }
 0x48f   :  { %1212 = vmatprep.subr.bf16.mxu0 %v2119_v42  ;;  %1253 = vmatprep.subr.bf16.mxu1 %v2121_v43  ;;  %v2651_v42 = vld [vmem:[#allocation20_spill] sm:$0xff] }
 0x492   :  { %1213 = vmatpush1.bf16.msra.mxu0 %v2125_v45  ;;  %1254 = vmatpush1.bf16.msra.mxu1 %v2127_v46 }
 0x493   :  { %1214 = vmatprep.subr.bf16.mxu0 %v2131_v47  ;;  %1255 = vmatprep.subr.bf16.mxu1 %v2135_v48  ;;  %v2652_v47 = vld [vmem:[#allocation21_spill] sm:$0xff] }
 0x496   :  { %1215 = vmatpush1.bf16.msra.mxu0 %v2137_v49  ;;  %1256 = vmatpush1.bf16.msra.mxu1 %v2139_v50  ;;  %v2653_v49 = vld [vmem:[#allocation22_spill] sm:$0xff] }
 0x497   :  { %1216 = vmatprep.subr.bf16.mxu0 %v2143_v51  ;;  %1257 = vmatprep.subr.bf16.mxu1 %v2147_v52 }
 0x49a   :  { %1217 = vmatpush1.bf16.msra.mxu0 %v2153_v54  ;;  %1258 = vmatpush1.bf16.msra.mxu1 %v2155_v55 }
 0x49b   :  { %1218 = vmatprep.subr.bf16.mxu0 %v2159_v56  ;;  %1259 = vmatprep.subr.bf16.mxu1 %v2161_v57 }
 0x49e   :  { %1219 = vmatpush1.bf16.msra.mxu0 %v2165_v58  ;;  %1260 = vmatpush1.bf16.msra.mxu1 %v2167_v59 }
 0x49f   :  { %1220 = vmatprep.subr.bf16.mxu0 %v2171_v60  ;;  %1261 = vmatprep.subr.bf16.mxu1 %v2173_v61 }
 0x4a2   :  { %1221 = vmatpush1.bf16.msra.mxu0 %v2179_v63  ;;  %1262 = vmatpush1.bf16.msra.mxu1 %v2181_v1 }
 0x4a3   :  { %1222 = vmatprep.subr.bf16.mxu0 %v2185_v2  ;;  %1263 = vmatprep.subr.bf16.mxu1 %v2187_v3 }
 0x4a6   :  { %1223 = vmatpush1.bf16.msra.mxu0 %v2191_v4  ;;  %1264 = vmatpush1.bf16.msra.mxu1 %v2193_v5 }
 0x4a7   :  { %1319 = vmatprep.subr.bf16.mxu0 %v2483_v36  ;;  %1360 = vmatprep.subr.bf16.mxu1 %v2486_v37 }
 0x55c   :  { %v1131_v38 = vpop.f32.mrb[32].mxu0  ;;  %v1172_v39 = vpop.f32.mrb[32].mxu1 }
 0x55d   :  { %v1179_v41 = vadd.f32 %v1131_v38, %v2650_v40  ;;  %v1181_v43 = vadd.f32 %v1172_v39, %v2651_v42  ;;  %v1133_v45 = vpop.f32.mrb[33].mxu0  ;;  %v1174_v46 = vpop.f32.mrb[33].mxu1  ;;  %v2541_v38 = vld [vmem:[#allocation9 + $0x84] ss:$16 sps:$4 sm:$0xff]   ;;  %v2544_v39 = vld [vmem:[#allocation9 + $0x8c] ss:$16 sps:$4 sm:$0xff]  }
 0x55e   :  { %v1180_v48 = vadd.f32 %v1133_v45, %v2652_v47  ;;  %v1182_v50 = vadd.f32 %v1174_v46, %v2653_v49  ;;  %v1135_v51 = vpop.f32.mrb[34].mxu0  ;;  %v1176_v52 = vpop.f32.mrb[34].mxu1  ;;  %v2547_v40 = vld [vmem:[#allocation9 + $0x80] ss:$16 sps:$4 sm:$0xff]  }
 0x55f   :  { %v1642_v54 = vmul.f32 -1.442695, %v1179_v41  ;;  %v1136_v55 = vpop.f32.mrb[35].mxu0  ;;  %v1177_v6 = vpop.f32.mrb[35].mxu1  ;;  %v2550_v41 = vld [vmem:[#allocation9 + $0x88] ss:$16 sps:$4 sm:$0xff]  }
 0x560   :  { %v1643_v14 = vmul.f32 -1.442695, %v1180_v48  ;;  %v1644_v16 = vmul.f32 -1.442695, %v1182_v50  ;;  %v2656_v42 = vld [vmem:[#allocation25_spill] sm:$0xff] }
 0x561   :  { %1828 = vpow2.f32 %v1642_v54 }
 0x562   :  { %1830 = vpow2.f32 %v1643_v14 }
 0x563   :  { %1832 = vpow2.f32 %v1644_v16 }
 0x564   :  { %1834 = vtanh.f32 %v1181_v43  ;;  %v2657_v43 = vld [vmem:[#allocation26_spill] sm:$0xff] }
 0x56b   :  { %v1829_v18 = vpop.eup %1828 }
 0x56c   :  { %v1831_v17 = vpop.eup %1830  ;;  %v1186_v19 = vadd.f32 1.0, %v1829_v18 }
 0x56d   :  { %v1192_v0 = vadd.f32 1.0, %v1831_v17  ;;  %v1833_v20 = vpop.eup %1832 }
 0x56e   :  { %1836 = vrcp.f32 %v1186_v19  ;;  %v1835_v21 = vpop.eup %1834  ;;  %v1199_v26 = vadd.f32 1.0, %v1833_v20 }
 0x56f   :  { %1838 = vrcp.f32 %v1192_v0 }
 0x570   :  { %1840 = vrcp.f32 %v1199_v26  ;;  %v1916_v26 = vld [vmem:[#allocation9 + $0xc4] ss:$16 sps:$4 sm:$0xff]  }
 0x578   :  { %v1837_v27 = vpop.eup %1836 }
 0x579   :  { %v1839_v9 = vpop.eup %1838  ;;  %v1203_v24 = vmul.f32 %v1837_v27, %v1835_v21  ;;  %v1913_v27 = vld [vmem:[#allocation9 + $0xac] ss:$16 sps:$4 sm:$0xff]  }
 0x57a   :  { %v1202_v28 = vmul.f32 %v1839_v9, %v2448_v7  ;;  %v1841_v33 = vpop.eup %1840  ;;  %v2526_v7 = vld [vmem:[#allocation9 + $0x48] ss:$16 sps:$4 sm:$0xff]   ;;  %v1914_v9 = vld [vmem:[#allocation9 + $0xa0] ss:$16 sps:$4 sm:$0xff]  }
 0x57c   :  { %v2494_v53 = vadd.f32 %v1203_v24, %v1202_v28  ;;  %v1915_v24 = vld [vmem:[#allocation9 + $0xa8] ss:$16 sps:$4 sm:$0xff]   ;;  %v1917_v28 = vld [vmem:[#allocation9 + $0xcc] ss:$16 sps:$4 sm:$0xff]  }
 0x57e   :  { %1842 = vtanh.f32 %v2494_v53 }
 0x588   :  { %v1843_v34 = vpop.eup %1842 }
 0x589   :  { %v1206_v32 = vmul.f32 %v1843_v34, %v1841_v33  ;;  %v1919_v33 = vld [vmem:[#allocation9 + $0xc8] ss:$16 sps:$4 sm:$0xff]   ;;  %v1920_v34 = vld [vmem:[#allocation9 + $0xe4] ss:$16 sps:$4 sm:$0xff]  }
 0x58b   :  { %v1207_v44 = vpack.c.bf16 %v1206_v32, %v1206_v32  ;;  %v1921_v32 = vld [vmem:[#allocation9 + $0xec] ss:$16 sps:$4 sm:$0xff]  }
 0x58d   :  { %1241 = vmatmul.mubr.bf16.vlgmr.msra.gmra.mrb[36].mxu0 %v1207_v44  ;;  %1282 = vmatmul.mubr.bf16.vlgmr.msra.gmra.mrb[36].mxu1 %v1207_v44  ;;  %v1922_v44 = vld [vmem:[#allocation9 + $0xe0] ss:$16 sps:$4 sm:$0xff]  }
 0x58e   :  { %1320 = vmatpush1.bf16.msra.mxu0 %v2497_v62  ;;  %1361 = vmatpush1.bf16.msra.mxu1 %v2500_v29 }
 0x58f   :  { %1321 = vmatprep.subr.bf16.mxu0 %v2503_v25  ;;  %1362 = vmatprep.subr.bf16.mxu1 %v2506_v11 }
 0x590   :  { %1351 = vmatprep.mubr.bf16.mxu0 %v2644_v22  ;;  %1392 = vmatprep.mubr.bf16.mxu1 %v2644_v22 }
 0x592   :  { %1322 = vmatpush1.bf16.msra.mxu0 %v2511_v35  ;;  %1363 = vmatpush1.bf16.msra.mxu1 %v2514_v10 }
 0x593   :  { %1323 = vmatprep.subr.bf16.mxu0 %v2517_v13  ;;  %1364 = vmatprep.subr.bf16.mxu1 %v2520_v8 }
 0x596   :  { %1324 = vmatpush1.bf16.msra.mxu0 %v2523_v12  ;;  %1365 = vmatpush1.bf16.msra.mxu1 %v2526_v7 }
 0x597   :  { %1325 = vmatprep.subr.bf16.mxu0 %v2529_v23  ;;  %1366 = vmatprep.subr.bf16.mxu1 %v2532_v30 }
 0x59a   :  { %1326 = vmatpush1.bf16.msra.mxu0 %v2535_v31  ;;  %1367 = vmatpush1.bf16.msra.mxu1 %v2538_v15 }
 0x59b   :  { %1327 = vmatprep.subr.bf16.mxu0 %v2541_v38  ;;  %1368 = vmatprep.subr.bf16.mxu1 %v2544_v39 }
 0x59e   :  { %1328 = vmatpush1.bf16.msra.mxu0 %v2547_v40  ;;  %1369 = vmatpush1.bf16.msra.mxu1 %v2550_v41 }
 0x59f   :  { %1329 = vmatprep.subr.bf16.mxu0 %v2159_v56  ;;  %1370 = vmatprep.subr.bf16.mxu1 %v2161_v57 }
 0x5a2   :  { %1330 = vmatpush1.bf16.msra.mxu0 %v2165_v58  ;;  %1371 = vmatpush1.bf16.msra.mxu1 %v2167_v59  ;;  %v2654_v58 = vld [vmem:[#allocation23_spill] sm:$0xff] }
 0x5a3   :  { %1331 = vmatprep.subr.bf16.mxu0 %v2171_v60  ;;  %1372 = vmatprep.subr.bf16.mxu1 %v2173_v61  ;;  %v2655_v60 = vld [vmem:[#allocation24_spill] sm:$0xff] }
 0x5a6   :  { %1332 = vmatpush1.bf16.msra.mxu0 %v2179_v63  ;;  %1373 = vmatpush1.bf16.msra.mxu1 %v2181_v1 }
 0x5a7   :  { %1333 = vmatprep.subr.bf16.mxu0 %v2185_v2  ;;  %1374 = vmatprep.subr.bf16.mxu1 %v2187_v3 }
 0x5aa   :  { %1334 = vmatpush1.bf16.msra.mxu0 %v2191_v4  ;;  %1375 = vmatpush1.bf16.msra.mxu1 %v2193_v5 }
 0x5ab   :  { %1430 = vmatprep.subr.bf16.mxu0 %v2483_v36  ;;  %1471 = vmatprep.subr.bf16.mxu1 %v2486_v37 }
 0x660   :  { %v1242_v56 = vpop.f32.mrb[36].mxu0  ;;  %v1283_v57 = vpop.f32.mrb[36].mxu1 }
 0x661   :  { %v1290_v59 = vadd.f32 %v1242_v56, %v2654_v58  ;;  %v1292_v61 = vadd.f32 %v1283_v57, %v2655_v60  ;;  %v1244_v63 = vpop.f32.mrb[37].mxu0  ;;  %v1285_v1 = vpop.f32.mrb[37].mxu1 }
 0x662   :  { %v1291_v2 = vadd.f32 %v1244_v63, %v2656_v42  ;;  %v1293_v3 = vadd.f32 %v1285_v1, %v2657_v43  ;;  %v1246_v45 = vpop.f32.mrb[38].mxu0  ;;  %v1287_v4 = vpop.f32.mrb[38].mxu1 }
 0x663   :  { %v1645_v46 = vmul.f32 -1.442695, %v1290_v59  ;;  %v1247_v5 = vpop.f32.mrb[39].mxu0  ;;  %v1288_v47 = vpop.f32.mrb[39].mxu1 }
 0x664   :  { %v1646_v36 = vmul.f32 -1.442695, %v1291_v2  ;;  %v1647_v37 = vmul.f32 -1.442695, %v1293_v3 }
 0x665   :  { %1844 = vpow2.f32 %v1645_v46 }
 0x666   :  { %1846 = vpow2.f32 %v1646_v36 }
 0x667   :  { %1848 = vpow2.f32 %v1647_v37 }
 0x668   :  { %1850 = vtanh.f32 %v1292_v61 }
 0x66f   :  { %v1845_v48 = vpop.eup %1844 }
 0x670   :  { %v1847_v49 = vpop.eup %1846  ;;  %v1297_v50 = vadd.f32 1.0, %v1845_v48 }
 0x671   :  { %v1303_v51 = vadd.f32 1.0, %v1847_v49  ;;  %v1849_v52 = vpop.eup %1848  ;;  %v2662_v49 = vld [vmem:[#allocation31_spill] sm:$0xff] }
 0x672   :  { %1852 = vrcp.f32 %v1297_v50  ;;  %v1851_v54 = vpop.eup %1850  ;;  %v1310_v16 = vadd.f32 1.0, %v1849_v52 }
 0x673   :  { %1854 = vrcp.f32 %v1303_v51  ;;  %v2663_v51 = vld [vmem:[#allocation32_spill] sm:$0xff] }
 0x674   :  { %1856 = vrcp.f32 %v1310_v16  ;;  %v2665_v16 = vld [vmem:[#allocation34_spill] sm:$0xff] }
 0x67c   :  { %v1853_v55 = vpop.eup %1852 }
 0x67d   :  { %v1855_v6 = vpop.eup %1854  ;;  %v1314_v14 = vmul.f32 %v1853_v55, %v1851_v54 }
 0x67e   :  { %v1313_v18 = vmul.f32 %v1855_v6, %v2494_v53  ;;  %v1857_v19 = vpop.eup %1856  ;;  %v1918_v53 = vld [vmem:[#allocation9 + $0xc0] ss:$16 sps:$4 sm:$0xff]  }
 0x67f   :  { %v2664_v6 = vld [vmem:[#allocation33_spill] sm:$0xff] }
 0x680   :  { %v2572_v17 = vadd.f32 %v1314_v14, %v1313_v18 }
 0x682   :  { %1858 = vtanh.f32 %v2572_v17 }
 0x68c   :  { %v1859_v0 = vpop.eup %1858 }
 0x68d   :  { %v1317_v20 = vmul.f32 %v1859_v0, %v1857_v19 }
 0x68f   :  { %v1318_v21 = vpack.c.bf16 %v1317_v20, %v1317_v20 }
 0x691   :  { %1352 = vmatmul.mubr.bf16.vlgmr.msra.gmra.mrb[40].mxu0 %v1318_v21  ;;  %1393 = vmatmul.mubr.bf16.vlgmr.msra.gmra.mrb[40].mxu1 %v1318_v21 }
 0x692   :  { %1431 = vmatpush1.bf16.msra.mxu0 %v2497_v62  ;;  %1472 = vmatpush1.bf16.msra.mxu1 %v2500_v29  ;;  %v1923_v62 = vld [vmem:[#allocation9 + $0xe8] ss:$16 sps:$4 sm:$0xff]  }
 0x693   :  { %1432 = vmatprep.subr.bf16.mxu0 %v2503_v25  ;;  %1473 = vmatprep.subr.bf16.mxu1 %v2506_v11  ;;  %v2658_v11 = vld [vmem:[#allocation27_spill] sm:$0xff] }
 0x694   :  { %1462 = vmatprep.mubr.bf16.mxu0 %v2644_v22  ;;  %1503 = vmatprep.mubr.bf16.mxu1 %v2644_v22  ;;  %v1912_v22 = vld [vmem:[#allocation9 + $0xa4] ss:$16 sps:$4 sm:$0xff]  }
 0x696   :  { %1433 = vmatpush1.bf16.msra.mxu0 %v2511_v35  ;;  %1474 = vmatpush1.bf16.msra.mxu1 %v2514_v10  ;;  %v2659_v10 = vld [vmem:[#allocation28_spill] sm:$0xff] }
 0x697   :  { %1434 = vmatprep.subr.bf16.mxu0 %v2517_v13  ;;  %1475 = vmatprep.subr.bf16.mxu1 %v2520_v8 }
 0x69a   :  { %1435 = vmatpush1.bf16.msra.mxu0 %v2523_v12  ;;  %1476 = vmatpush1.bf16.msra.mxu1 %v2526_v7  ;;  %v2660_v7 = vld [vmem:[#allocation29_spill] sm:$0xff] }
 0x69b   :  { %1436 = vmatprep.subr.bf16.mxu0 %v2529_v23  ;;  %1477 = vmatprep.subr.bf16.mxu1 %v2532_v30  ;;  %v2661_v30 = vld [vmem:[#allocation30_spill] sm:$0xff] }
 0x69e   :  { %1437 = vmatpush1.bf16.msra.mxu0 %v2535_v31  ;;  %1478 = vmatpush1.bf16.msra.mxu1 %v2538_v15 }
 0x69f   :  { %1438 = vmatprep.subr.bf16.mxu0 %v2541_v38  ;;  %1479 = vmatprep.subr.bf16.mxu1 %v2544_v39 }
 0x6a2   :  { %1439 = vmatpush1.bf16.msra.mxu0 %v2547_v40  ;;  %1480 = vmatpush1.bf16.msra.mxu1 %v2550_v41 }
 0x6a3   :  { %1440 = vmatprep.subr.bf16.mxu0 %v1912_v22  ;;  %1481 = vmatprep.subr.bf16.mxu1 %v1913_v27 }
 0x6a6   :  { %1441 = vmatpush1.bf16.msra.mxu0 %v1914_v9  ;;  %1482 = vmatpush1.bf16.msra.mxu1 %v1915_v24 }
 0x6a7   :  { %1442 = vmatprep.subr.bf16.mxu0 %v1916_v26  ;;  %1483 = vmatprep.subr.bf16.mxu1 %v1917_v28 }
 0x6aa   :  { %1443 = vmatpush1.bf16.msra.mxu0 %v1918_v53  ;;  %1484 = vmatpush1.bf16.msra.mxu1 %v1919_v33 }
 0x6ab   :  { %1444 = vmatprep.subr.bf16.mxu0 %v1920_v34  ;;  %1485 = vmatprep.subr.bf16.mxu1 %v1921_v32 }
 0x6ae   :  { %1445 = vmatpush1.bf16.msra.mxu0 %v1922_v44  ;;  %1486 = vmatpush1.bf16.msra.mxu1 %v1923_v62 }
 0x764   :  { %v1353_v29 = vpop.f32.mrb[40].mxu0  ;;  %v1394_v25 = vpop.f32.mrb[40].mxu1 }
 0x765   :  { %v1401_v35 = vadd.f32 %v1353_v29, %v2658_v11  ;;  %v1403_v13 = vadd.f32 %v1394_v25, %v2659_v10  ;;  %v1355_v8 = vpop.f32.mrb[41].mxu0  ;;  %v1396_v12 = vpop.f32.mrb[41].mxu1 }
 0x766   :  { %v1402_v23 = vadd.f32 %v1355_v8, %v2660_v7  ;;  %v1404_v31 = vadd.f32 %v1396_v12, %v2661_v30  ;;  %v1357_v15 = vpop.f32.mrb[42].mxu0  ;;  %v1398_v38 = vpop.f32.mrb[42].mxu1 }
 0x767   :  { %v1648_v39 = vmul.f32 -1.442695, %v1401_v35  ;;  %v1358_v40 = vpop.f32.mrb[43].mxu0  ;;  %v1399_v41 = vpop.f32.mrb[43].mxu1 }
 0x768   :  { %v1649_v56 = vmul.f32 -1.442695, %v1402_v23  ;;  %v1650_v57 = vmul.f32 -1.442695, %v1404_v31 }
 0x769   :  { %1860 = vpow2.f32 %v1648_v39 }
 0x76a   :  { %1862 = vpow2.f32 %v1649_v56 }
 0x76b   :  { %1864 = vpow2.f32 %v1650_v57 }
 0x76c   :  { %1866 = vtanh.f32 %v1403_v13 }
 0x773   :  { %v1861_v58 = vpop.eup %1860 }
 0x774   :  { %v1863_v59 = vpop.eup %1862  ;;  %v1408_v60 = vadd.f32 1.0, %v1861_v58 }
 0x775   :  { %v1414_v61 = vadd.f32 1.0, %v1863_v59  ;;  %v1865_v63 = vpop.eup %1864 }
 0x776   :  { %1868 = vrcp.f32 %v1408_v60  ;;  %v1867_v1 = vpop.eup %1866  ;;  %v1421_v3 = vadd.f32 1.0, %v1865_v63 }
 0x777   :  { %1870 = vrcp.f32 %v1414_v61 }
 0x778   :  { %1872 = vrcp.f32 %v1421_v3 }
 0x780   :  { %v1869_v42 = vpop.eup %1868 }
 0x781   :  { %v1871_v2 = vpop.eup %1870  ;;  %v1425_v43 = vmul.f32 %v1869_v42, %v1867_v1 }
 0x782   :  { %v1424_v45 = vmul.f32 %v1871_v2, %v2572_v17  ;;  %v1873_v46 = vpop.eup %1872 }
 0x784   :  { %v1426_v4 = vadd.f32 %v1425_v43, %v1424_v45 }
 0x786   :  { %1874 = vtanh.f32 %v1426_v4 }
 0x790   :  { %v1875_v5 = vpop.eup %1874 }
 0x791   :  { %v1428_v47 = vmul.f32 %v1875_v5, %v1873_v46 }
 0x793   :  { %v1429_v36 = vpack.c.bf16 %v1428_v47, %v1428_v47 }
 0x795   :  { %1463 = vmatmul.mubr.bf16.vlgmr.msra.gmra.mrb[44].mxu0 %v1429_v36  ;;  %1504 = vmatmul.mubr.bf16.vlgmr.msra.gmra.mrb[44].mxu1 %v1429_v36 }
 0x868   :  { %v1464_v37 = vpop.f32.mrb[44].mxu0  ;;  %v1505_v48 = vpop.f32.mrb[44].mxu1 }
 0x869   :  { %v1512_v50 = vadd.f32 %v1464_v37, %v2662_v49  ;;  %v1514_v52 = vadd.f32 %v1505_v48, %v2663_v51  ;;  %v1466_v54 = vpop.f32.mrb[45].mxu0  ;;  %v1507_v55 = vpop.f32.mrb[45].mxu1 }
 0x86a   :  { %v1513_v14 = vadd.f32 %v1466_v54, %v2664_v6  ;;  %v1515_v18 = vadd.f32 %v1507_v55, %v2665_v16  ;;  %v1468_v17 = vpop.f32.mrb[46].mxu0  ;;  %v1509_v19 = vpop.f32.mrb[46].mxu1 }
 0x86b   :  { %v1651_v0 = vmul.f32 -1.442695, %v1512_v50  ;;  %v1469_v20 = vpop.f32.mrb[47].mxu0  ;;  %v1510_v21 = vpop.f32.mrb[47].mxu1 }
 0x86c   :  { %v1652_v22 = vmul.f32 -1.442695, %v1513_v14  ;;  %v1653_v27 = vmul.f32 -1.442695, %v1515_v18 }
 0x86d   :  { %1876 = vpow2.f32 %v1651_v0 }
 0x86e   :  { %1878 = vpow2.f32 %v1652_v22 }
 0x86f   :  { %1880 = vpow2.f32 %v1653_v27 }
 0x870   :  { %1882 = vtanh.f32 %v1514_v52 }
 0x877   :  { %v1877_v9 = vpop.eup %1876 }
 0x878   :  { %v1879_v24 = vpop.eup %1878  ;;  %v1519_v26 = vadd.f32 1.0, %v1877_v9 }
 0x879   :  { %v1525_v28 = vadd.f32 1.0, %v1879_v24  ;;  %v1881_v53 = vpop.eup %1880 }
 0x87a   :  { %1884 = vrcp.f32 %v1519_v26  ;;  %v1883_v33 = vpop.eup %1882  ;;  %v1532_v62 = vadd.f32 1.0, %v1881_v53 }
 0x87b   :  { %1886 = vrcp.f32 %v1525_v28 }
 0x87c   :  { %1888 = vrcp.f32 %v1532_v62 }
 0x884   :  { %v1885_v34 = vpop.eup %1884 }
 0x885   :  { %v1887_v32 = vpop.eup %1886  ;;  %v1536_v44 = vmul.f32 %v1885_v34, %v1883_v33 }
 0x886   :  { %v1535_v29 = vmul.f32 %v1887_v32, %v1426_v4  ;;  %v1889_v11 = vpop.eup %1888 }
 0x888   :  { %v1537_v25 = vadd.f32 %v1536_v44, %v1535_v29 }
 0x88a   :  { %1890 = vtanh.f32 %v1537_v25 }
 0x894   :  { %v1891_v35 = vpop.eup %1890 }
 0x895   :  { %v1539_v10 = vmul.f32 %v1891_v35, %v1889_v11 }
 0x897   :  { %1545 = vst [vmem:[#allocation10] sm:$0xff] %v1539_v10 }
 0x898   :  { %2001 = shalt.err (!%p1998_p0)
}
 0x899   :  { %s2002_s6 = scalar_lea.hbm %s2620_s4, 128 }
 0x89a   :  { %p2003_p1 = scmp.ne.s32.totalorder %s2620_s4, %s2002_s6  ;;  %p2006_p2 = scmp.lt.u32.totalorder %s2002_s6, %s2620_s4 }
 0x89c   :  { %p2008_p3 = pnand %p2006_p2, %p2003_p1 }
 0x89e   :  { %2011 = shalt.err (!%p2008_p3)
}
 0x89f   :  { %1555 = dma.vmem_to_hbm [thread:$0]  %s1553_s26, 128, %s2620_s4, [#allocation6]  }
 0x8a0   :  { %2016 = dma.done.wait [#allocation6], 128  }
 0x8a1   :  { %2017 = vsyncadd [#allocation6], 4294967168 }
 0x8a2   :  { %1559 = vsyncpa [#allocation5], 1 }
 0x8a3   :  { %1560 = vsyncpa [#allocation8], 1 }
 0x8a4   :  { %1561 = vsyncpa [#allocation6], 1 }

</bundles_post_ra>
